<compile_context>
chip_gen: v5e
topology: v5e:2x2
jax: 0.10.0
libtpu: 0.0.40
codegen_flags: <defaults>
</compile_context>

<pallas_src>
import functools

import jax
import jax.numpy as jnp
from jax.experimental import pallas as pl
from jax.experimental.pallas import tpu as pltpu

# Packed parameter layout (8 weight operands instead of 26):
#   win  : (Din, D)          input Linear weight (its bias lives in vecd[L, 0])
#   wqkv : (L, D+1, 3D)      fused q|k|v in-projection; row D is the fused bias
#   wo   : (L, D, D)         attention out-projection (bias bo in vecd[:, 0])
#   w1   : (L, D+1, DI)      FF linear1; row D is the bias
#   w2   : (L, DI, D)        FF linear2 (bias b2 in vecd[:, 3])
#   vecd : (L+1, 6, D)       per-layer rows [bo, g1, be1, b2, g2, be2];
#                            row-set L holds [bin, gf, bf, 0, 0, 0]
#   wf1  : (D+2*Din+1, 3D)   head linear1, rows [pool | bayes | last | bias]
#                            (pool block first so the D-row slice is aligned)
#   wf2  : (3D+1, C)         head linear2; last row is the bias
PARAM_ORDER = ["win", "wqkv", "wo", "w1", "w2", "vecd", "wf1", "wf2"]


def _mm(a, b):
    return jnp.dot(a, b, preferred_element_type=jnp.float32)


def _mm_nt(a, b):  # a @ b.T without an explicit transpose op
    return jax.lax.dot_general(a, b, (((1,), (1,)), ((), ())),
                               preferred_element_type=jnp.float32)


def _layer_norm(v, g, b, eps=1e-5):
    mu = jnp.mean(v, axis=-1, keepdims=True)
    vc = v - mu
    var = jnp.mean(vc * vc, axis=-1, keepdims=True)
    return vc * jax.lax.rsqrt(var + eps) * g + b


def _recip(x, approx):
    return pl.reciprocal(x, approx=True) if approx else 1.0 / x


def _forward(x2, p, dims, approx_recip):
    """Forward pass.  `p` values may be Pallas Refs (in-kernel) or plain jnp
    arrays (pure-JAX reference); only whole-(sub)array loads touch the Refs,
    all slicing happens on loaded values at static offsets."""
    T, B, Din, D, H, L, DI, C = dims
    TB = T * B
    dh = D // H
    scale = 1.0 / (dh ** 0.5)

    # Block-diagonal additive attention mask, built in-kernel (no operand, no
    # integer division: T is tiny and static, so unroll the group test).
    row = jax.lax.broadcasted_iota(jnp.int32, (TB, TB), 0)
    col = jax.lax.broadcasted_iota(jnp.int32, (TB, TB), 1)
    same = None
    for t in range(T):
        lo, hi = t * B, (t + 1) * B
        blk = (row >= lo) & (row < hi) & (col >= lo) & (col < hi)
        same = blk if same is None else (same | blk)
    attn_bias = jnp.where(same, 0.0, -1e30).astype(jnp.float32)

    vec_fin = p["vecd"][L]                                   # [bin, gf, bf, ...]

    # ---- attention = Sequential(Linear, ReLU, TransformerEncoder) ----
    z = jnp.maximum(_mm(x2, p["win"][...]) + vec_fin[0:1], 0.0)       # (T*B, D)

    for l in range(L):                                       # eval mode (no dropout)
        wqkv = p["wqkv"][l]                                  # (D+1, 3D)
        wo = p["wo"][l]                                      # (D, D)
        w1 = p["w1"][l]                                      # (D+1, DI)
        w2 = p["w2"][l]                                      # (DI, D)
        vec = p["vecd"][l]                                   # (6, D)
        bo, g1, be1, b2, g2, be2 = (vec[i:i + 1] for i in range(6))

        # Fused q|k|v projection: one MXU push per layer, bias added once.
        qkv = _mm(z, wqkv[0:D]) + wqkv[D:D + 1]              # (T*B, 3D)

        # Per-head attention over all T groups at once (block-diagonal mask).
        # Head operands are static lane slices; scaling the scores is
        # equivalent to PyTorch's post-bias q scaling.
        ctx = []
        for h in range(H):
            qh = qkv[:, h * dh:(h + 1) * dh]
            kh = qkv[:, D + h * dh:D + (h + 1) * dh]
            vh = qkv[:, 2 * D + h * dh:2 * D + (h + 1) * dh]
            s = _mm_nt(qh, kh) * scale + attn_bias           # (T*B, T*B)
            m = jnp.max(s, axis=-1, keepdims=True)
            e = jnp.exp(s - m)
            w = e * _recip(jnp.sum(e, axis=-1, keepdims=True), approx_recip)
            ctx.append(_mm(w, vh))                           # (T*B, dh)
        ctx = jnp.concatenate(ctx, axis=-1)                  # (T*B, D)

        attn = _mm(ctx, wo) + bo                             # fused out-proj
        z = _layer_norm(z + attn, g1, be1)                   # post-norm

        ff = jnp.maximum(_mm(z, w1[0:D]) + w1[D:D + 1], 0.0)  # (T*B, DI)
        ff = _mm(ff, w2) + b2
        z = _layer_norm(z + ff, g2, be2)

    enc = _layer_norm(z, vec_fin[1:2], vec_fin[2:3])         # final encoder norm

    # ---- MaxPool1d(3) over T + squeeze -> (B, D) (single window t = 0..2) ----
    pooled = jnp.maximum(jnp.maximum(enc[0:B], enc[B:2 * B]), enc[2 * B:3 * B])

    # ---- bayes = sum over T; last timestep: static row slices of x2 ----
    bayes = x2[0:B]
    for t in range(1, T):
        bayes = bayes + x2[t * B:(t + 1) * B]
    xlast = x2[(T - 1) * B:T * B]

    # ---- final head: wf1 rows are [pool | bayes | last | bias] ----
    wf1 = p["wf1"][...]
    h1 = (_mm(pooled, wf1[0:D]) + _mm(bayes, wf1[D:D + Din])
          + _mm(xlast, wf1[D + Din:D + 2 * Din]) + wf1[D + 2 * Din:D + 2 * Din + 1])
    h1 = jnp.maximum(h1, 0.0)                                # (B, 3D)
    wf2 = p["wf2"][...]
    logits = _mm(h1, wf2[0:3 * D]) + wf2[3 * D:3 * D + 1]    # (B, C)

    m = jnp.max(logits, axis=-1, keepdims=True)
    lse = m + jnp.log(jnp.sum(jnp.exp(logits - m), axis=-1, keepdims=True))
    return logits - lse                                      # log_softmax


def _kernel(dims, x2_ref, *refs):
    p = dict(zip(PARAM_ORDER, refs[:len(PARAM_ORDER)]))
    out_ref = refs[len(PARAM_ORDER)]
    out_ref[...] = _forward(x2_ref[...], p, dims, approx_recip=True)


def transformer_model3_forward(x, params, dims):
    """x: (B, T, input_dim) float32, PyTorch layout.  Returns (B, num_classes) log-probs."""
    T, B, Din, D, H, L, DI, C = dims
    assert x.shape == (B, T, Din)
    assert T >= 3 and (T - 3) // 3 + 1 == 1, "forward requires pooled length == 1"

    # Sequence-major flatten (row index t*B + b) so attention groups are
    # contiguous sublane blocks; done once at trace time outside the kernel.
    x2 = jnp.transpose(x, (1, 0, 2)).reshape(T * B, Din)

    inputs = [x2] + [params[k] for k in PARAM_ORDER]
    vmem = pltpu.MemorySpace.VMEM
    return pl.pallas_call(
        functools.partial(_kernel, dims),
        out_shape=jax.ShapeDtypeStruct((B, C), jnp.float32),
        in_specs=[pl.BlockSpec(memory_space=vmem) for _ in inputs],
        out_specs=pl.BlockSpec(memory_space=vmem),
        # Whole problem (<< 1 MiB of operands) stays resident in one grid-less
        # block.  At realistic B, add a "parallel" grid axis over the T groups
        # (shards across v7x's two TensorCores) and re-derive the score-tile /
        # VMEM budget for v7x's 64 MiB per core.
    )(*inputs)


def init_params(key, Din, D, H, L, DI, C):
    """Deterministic synthetic parameters in the packed kernel layout (weights
    pre-transposed for `x @ W`; biases folded as extra weight rows or stacked
    into `vecd`).  Small random biases/norm params so packing/slicing bugs
    would show up against the pure-JAX reference."""
    keys = iter(jax.random.split(key, 64))

    def w(shape, scale=0.1):
        return jax.random.normal(next(keys), shape, jnp.float32) * scale

    wqkv = jnp.concatenate([w((L, D, 3 * D)), w((L, 1, 3 * D), 0.02)], axis=1)
    w1 = jnp.concatenate([w((L, D, DI)), w((L, 1, DI), 0.02)], axis=1)
    wf1 = jnp.concatenate([w((D, 3 * D)),            # pool block
                           w((Din, 3 * D)),          # bayes block
                           w((Din, 3 * D)),          # last block
                           w((1, 3 * D), 0.02)],     # bias row
                          axis=0)
    wf2 = jnp.concatenate([w((3 * D, C)), w((1, C), 0.02)], axis=0)

    vecd = jnp.zeros((L + 1, 6, D), jnp.float32)
    for l in range(L):
        rows = jnp.stack([w((D,), 0.02),             # bo
                          1.0 + w((D,), 0.02),       # g1
                          w((D,), 0.02),             # be1
                          w((D,), 0.02),             # b2
                          1.0 + w((D,), 0.02),       # g2
                          w((D,), 0.02)])            # be2
        vecd = vecd.at[l].set(rows)
    vecd = vecd.at[L, 0].set(w((D,), 0.02))          # bin
    vecd = vecd.at[L, 1].set(1.0 + w((D,), 0.02))    # gf
    vecd = vecd.at[L, 2].set(w((D,), 0.02))          # bf

    return {"win": w((Din, D), 0.3), "wqkv": wqkv, "wo": w((L, D, D)),
            "w1": w1, "w2": w((L, DI, D)), "vecd": vecd, "wf1": wf1, "wf2": wf2}


if __name__ == "__main__":
    # Small shapes consistent with the module.  The module default
    # (d_model=64, n_head=3) is invalid for nn.MultiheadAttention; we use a
    # head count that divides d_model.  T must be 3..5 so that the forward's
    # MaxPool1d(3)+squeeze+cat type-checks.
    T, B, Din, D, H, L, DI, C = 3, 2, 4, 32, 4, 2, 64, 16
    dims = (T, B, Din, D, H, L, DI, C)

    key = jax.random.PRNGKey(0)
    kx, kp = jax.random.split(key)
    x = jax.random.normal(kx, (B, T, Din), jnp.float32)   # (batch, seq, input_dim)
    params = init_params(kp, Din, D, H, L, DI, C)

    fwd = jax.jit(functools.partial(transformer_model3_forward, dims=dims))
    out = jax.block_until_ready(fwd(x, params))

    # Pure-JAX reference: identical math, exact reciprocal instead of the
    # in-kernel EUP approximation.
    x2 = jnp.transpose(x, (1, 0, 2)).reshape(T * B, Din)
    ref = _forward(x2, params, dims, approx_recip=False)

    assert out.shape == (B, C)
    assert bool(jnp.all(jnp.isfinite(out)))
    assert bool(jnp.allclose(jnp.exp(out).sum(-1), 1.0, atol=1e-3))   # valid log-probs
    assert bool(jnp.allclose(out, ref, atol=2e-2, rtol=2e-2))

    # TODO(synk): dropout layers are eval-mode identity; training-mode dropout masks not implemented.
    print("KERNEL_OK")
</pallas_src>

<mosaic_0001>
module attributes {stable_mosaic.version = 11 : i64} {
  func.func @_kernel(%arg0: memref<6x4xf32, #tpu.memory_space<vmem>>, %arg1: memref<4x32xf32, #tpu.memory_space<vmem>>, %arg2: memref<2x33x96xf32, #tpu.memory_space<vmem>>, %arg3: memref<2x32x32xf32, #tpu.memory_space<vmem>>, %arg4: memref<2x33x64xf32, #tpu.memory_space<vmem>>, %arg5: memref<2x64x32xf32, #tpu.memory_space<vmem>>, %arg6: memref<3x6x32xf32, #tpu.memory_space<vmem>>, %arg7: memref<41x96xf32, #tpu.memory_space<vmem>>, %arg8: memref<97x16xf32, #tpu.memory_space<vmem>>, %arg9: memref<2x16xf32, #tpu.memory_space<vmem>>) attributes {dimension_semantics = [], scalar_prefetch = 0 : i64, scratch_operands = 0 : i64, tpu.core_type = #tpu.core_type<tc>} {
    %c0 = arith.constant 0 : index
    %c0_0 = arith.constant 0 : index
    %0 = vector.load %arg0[%c0, %c0_0] : memref<6x4xf32, #tpu.memory_space<vmem>>, vector<6x4xf32>
    %1 = tpu.iota {dimensions = array<i32: 0>} : vector<6x6xi32>
    %2 = tpu.iota {dimensions = array<i32: 1>} : vector<6x6xi32>
    %c0_i32 = arith.constant 0 : i32
    %3 = vector.broadcast %c0_i32 : i32 to vector<6x6xi32>
    %4 = arith.cmpi sge, %1, %3 : vector<6x6xi32>
    %c2_i32 = arith.constant 2 : i32
    %5 = vector.broadcast %c2_i32 : i32 to vector<6x6xi32>
    %6 = arith.cmpi slt, %1, %5 : vector<6x6xi32>
    %7 = arith.andi %4, %6 : vector<6x6xi1>
    %c0_i32_1 = arith.constant 0 : i32
    %8 = vector.broadcast %c0_i32_1 : i32 to vector<6x6xi32>
    %9 = arith.cmpi sge, %2, %8 : vector<6x6xi32>
    %10 = arith.andi %7, %9 : vector<6x6xi1>
    %c2_i32_2 = arith.constant 2 : i32
    %11 = vector.broadcast %c2_i32_2 : i32 to vector<6x6xi32>
    %12 = arith.cmpi slt, %2, %11 : vector<6x6xi32>
    %13 = arith.andi %10, %12 : vector<6x6xi1>
    %c2_i32_3 = arith.constant 2 : i32
    %14 = vector.broadcast %c2_i32_3 : i32 to vector<6x6xi32>
    %15 = arith.cmpi sge, %1, %14 : vector<6x6xi32>
    %c4_i32 = arith.constant 4 : i32
    %16 = vector.broadcast %c4_i32 : i32 to vector<6x6xi32>
    %17 = arith.cmpi slt, %1, %16 : vector<6x6xi32>
    %18 = arith.andi %15, %17 : vector<6x6xi1>
    %c2_i32_4 = arith.constant 2 : i32
    %19 = vector.broadcast %c2_i32_4 : i32 to vector<6x6xi32>
    %20 = arith.cmpi sge, %2, %19 : vector<6x6xi32>
    %21 = arith.andi %18, %20 : vector<6x6xi1>
    %c4_i32_5 = arith.constant 4 : i32
    %22 = vector.broadcast %c4_i32_5 : i32 to vector<6x6xi32>
    %23 = arith.cmpi slt, %2, %22 : vector<6x6xi32>
    %24 = arith.andi %21, %23 : vector<6x6xi1>
    %25 = arith.ori %13, %24 : vector<6x6xi1>
    %c4_i32_6 = arith.constant 4 : i32
    %26 = vector.broadcast %c4_i32_6 : i32 to vector<6x6xi32>
    %27 = arith.cmpi sge, %1, %26 : vector<6x6xi32>
    %c6_i32 = arith.constant 6 : i32
    %28 = vector.broadcast %c6_i32 : i32 to vector<6x6xi32>
    %29 = arith.cmpi slt, %1, %28 : vector<6x6xi32>
    %30 = arith.andi %27, %29 : vector<6x6xi1>
    %c4_i32_7 = arith.constant 4 : i32
    %31 = vector.broadcast %c4_i32_7 : i32 to vector<6x6xi32>
    %32 = arith.cmpi sge, %2, %31 : vector<6x6xi32>
    %33 = arith.andi %30, %32 : vector<6x6xi1>
    %c6_i32_8 = arith.constant 6 : i32
    %34 = vector.broadcast %c6_i32_8 : i32 to vector<6x6xi32>
    %35 = arith.cmpi slt, %2, %34 : vector<6x6xi32>
    %36 = arith.andi %33, %35 : vector<6x6xi1>
    %37 = arith.ori %25, %36 : vector<6x6xi1>
    %cst = arith.constant 0.000000e+00 : f32
    %cst_9 = arith.constant -1.000000e+30 : f32
    %38 = vector.broadcast %cst : f32 to vector<6x6xf32>
    %39 = vector.broadcast %cst_9 : f32 to vector<6x6xf32>
    %40 = arith.select %37, %38, %39 : vector<6x6xi1>, vector<6x6xf32>
    %c2 = arith.constant 2 : index
    %c0_10 = arith.constant 0 : index
    %c0_11 = arith.constant 0 : index
    %41 = vector.load %arg6[%c2, %c0_10, %c0_11] : memref<3x6x32xf32, #tpu.memory_space<vmem>>, vector<1x6x32xf32>
    %42 = vector.shape_cast %41 : vector<1x6x32xf32> to vector<6x32xf32>
    %c0_12 = arith.constant 0 : index
    %c0_13 = arith.constant 0 : index
    %43 = vector.load %arg1[%c0_12, %c0_13] : memref<4x32xf32, #tpu.memory_space<vmem>>, vector<4x32xf32>
    %cst_14 = arith.constant dense<0.000000e+00> : vector<6x32xf32>
    %44 = tpu.matmul %0, %43, %cst_14 {dimension_numbers = #tpu.dot_dimension_numbers<[1], [0], [0], [1], [0, 0, 1, 1], [], []>} : vector<6x4xf32>, vector<4x32xf32>, vector<6x32xf32> -> vector<6x32xf32>
    %45 = vector.extract_strided_slice %42 {offsets = [0, 0], sizes = [1, 32], strides = [1, 1]} : vector<6x32xf32> to vector<1x32xf32>
    %46 = vector.broadcast %45 : vector<1x32xf32> to vector<6x32xf32>
    %47 = arith.addf %44, %46 : vector<6x32xf32>
    %cst_15 = arith.constant 0.000000e+00 : f32
    %48 = vector.broadcast %cst_15 : f32 to vector<6x32xf32>
    %49 = arith.maximumf %47, %48 : vector<6x32xf32>
    %c0_16 = arith.constant 0 : index
    %c0_17 = arith.constant 0 : index
    %c0_18 = arith.constant 0 : index
    %50 = vector.load %arg2[%c0_16, %c0_17, %c0_18] : memref<2x33x96xf32, #tpu.memory_space<vmem>>, vector<1x33x96xf32>
    %51 = vector.shape_cast %50 : vector<1x33x96xf32> to vector<33x96xf32>
    %c0_19 = arith.constant 0 : index
    %c0_20 = arith.constant 0 : index
    %c0_21 = arith.constant 0 : index
    %52 = vector.load %arg3[%c0_19, %c0_20, %c0_21] : memref<2x32x32xf32, #tpu.memory_space<vmem>>, vector<1x32x32xf32>
    %53 = vector.shape_cast %52 : vector<1x32x32xf32> to vector<32x32xf32>
    %c0_22 = arith.constant 0 : index
    %c0_23 = arith.constant 0 : index
    %c0_24 = arith.constant 0 : index
    %54 = vector.load %arg4[%c0_22, %c0_23, %c0_24] : memref<2x33x64xf32, #tpu.memory_space<vmem>>, vector<1x33x64xf32>
    %55 = vector.shape_cast %54 : vector<1x33x64xf32> to vector<33x64xf32>
    %c0_25 = arith.constant 0 : index
    %c0_26 = arith.constant 0 : index
    %c0_27 = arith.constant 0 : index
    %56 = vector.load %arg5[%c0_25, %c0_26, %c0_27] : memref<2x64x32xf32, #tpu.memory_space<vmem>>, vector<1x64x32xf32>
    %57 = vector.shape_cast %56 : vector<1x64x32xf32> to vector<64x32xf32>
    %c0_28 = arith.constant 0 : index
    %c0_29 = arith.constant 0 : index
    %c0_30 = arith.constant 0 : index
    %58 = vector.load %arg6[%c0_28, %c0_29, %c0_30] : memref<3x6x32xf32, #tpu.memory_space<vmem>>, vector<1x6x32xf32>
    %59 = vector.shape_cast %58 : vector<1x6x32xf32> to vector<6x32xf32>
    %60 = vector.extract_strided_slice %59 {offsets = [0, 0], sizes = [1, 32], strides = [1, 1]} : vector<6x32xf32> to vector<1x32xf32>
    %61 = vector.extract_strided_slice %59 {offsets = [1, 0], sizes = [1, 32], strides = [1, 1]} : vector<6x32xf32> to vector<1x32xf32>
    %62 = vector.extract_strided_slice %59 {offsets = [2, 0], sizes = [1, 32], strides = [1, 1]} : vector<6x32xf32> to vector<1x32xf32>
    %63 = vector.extract_strided_slice %59 {offsets = [3, 0], sizes = [1, 32], strides = [1, 1]} : vector<6x32xf32> to vector<1x32xf32>
    %64 = vector.extract_strided_slice %59 {offsets = [4, 0], sizes = [1, 32], strides = [1, 1]} : vector<6x32xf32> to vector<1x32xf32>
    %65 = vector.extract_strided_slice %59 {offsets = [5, 0], sizes = [1, 32], strides = [1, 1]} : vector<6x32xf32> to vector<1x32xf32>
    %66 = vector.extract_strided_slice %51 {offsets = [0, 0], sizes = [32, 96], strides = [1, 1]} : vector<33x96xf32> to vector<32x96xf32>
    %cst_31 = arith.constant dense<0.000000e+00> : vector<6x96xf32>
    %67 = tpu.matmul %49, %66, %cst_31 {dimension_numbers = #tpu.dot_dimension_numbers<[1], [0], [0], [1], [0, 0, 1, 1], [], []>} : vector<6x32xf32>, vector<32x96xf32>, vector<6x96xf32> -> vector<6x96xf32>
    %68 = vector.extract_strided_slice %51 {offsets = [32, 0], sizes = [1, 96], strides = [1, 1]} : vector<33x96xf32> to vector<1x96xf32>
    %69 = vector.broadcast %68 : vector<1x96xf32> to vector<6x96xf32>
    %70 = arith.addf %67, %69 : vector<6x96xf32>
    %71 = vector.extract_strided_slice %70 {offsets = [0, 0], sizes = [6, 8], strides = [1, 1]} : vector<6x96xf32> to vector<6x8xf32>
    %72 = vector.extract_strided_slice %70 {offsets = [0, 32], sizes = [6, 8], strides = [1, 1]} : vector<6x96xf32> to vector<6x8xf32>
    %73 = vector.extract_strided_slice %70 {offsets = [0, 64], sizes = [6, 8], strides = [1, 1]} : vector<6x96xf32> to vector<6x8xf32>
    %cst_32 = arith.constant dense<0.000000e+00> : vector<6x6xf32>
    %74 = tpu.matmul %71, %72, %cst_32 {dimension_numbers = #tpu.dot_dimension_numbers<[1], [1], [0], [0], [0, 0, 1, 0], [], []>} : vector<6x8xf32>, vector<6x8xf32>, vector<6x6xf32> -> vector<6x6xf32>
    %cst_33 = arith.constant 0.353553385 : f32
    %75 = vector.broadcast %cst_33 : f32 to vector<6x6xf32>
    %76 = arith.mulf %74, %75 : vector<6x6xf32>
    %77 = arith.addf %76, %40 : vector<6x6xf32>
    %cst_34 = arith.constant dense<0xFF800000> : vector<6xf32>
    %78 = vector.multi_reduction <maximumf>, %77, %cst_34 [1] : vector<6x6xf32> to vector<6xf32>
    %79 = vector.shape_cast %78 : vector<6xf32> to vector<6x1xf32>
    %80 = vector.broadcast %79 : vector<6x1xf32> to vector<6x6xf32>
    %81 = arith.subf %77, %80 : vector<6x6xf32>
    %82 = math.exp %81 : vector<6x6xf32>
    %cst_35 = arith.constant dense<0.000000e+00> : vector<6xf32>
    %83 = vector.multi_reduction <add>, %82, %cst_35 [1] : vector<6x6xf32> to vector<6xf32>
    %84 = vector.shape_cast %83 : vector<6xf32> to vector<6x1xf32>
    %85 = tpu.reciprocal %84 {approx = true} : vector<6x1xf32> -> vector<6x1xf32>
    %86 = vector.broadcast %85 : vector<6x1xf32> to vector<6x6xf32>
    %87 = arith.mulf %82, %86 : vector<6x6xf32>
    %cst_36 = arith.constant dense<0.000000e+00> : vector<6x8xf32>
    %88 = tpu.matmul %87, %73, %cst_36 {dimension_numbers = #tpu.dot_dimension_numbers<[1], [0], [0], [1], [0, 0, 1, 1], [], []>} : vector<6x6xf32>, vector<6x8xf32>, vector<6x8xf32> -> vector<6x8xf32>
    %89 = vector.extract_strided_slice %70 {offsets = [0, 8], sizes = [6, 8], strides = [1, 1]} : vector<6x96xf32> to vector<6x8xf32>
    %90 = vector.extract_strided_slice %70 {offsets = [0, 40], sizes = [6, 8], strides = [1, 1]} : vector<6x96xf32> to vector<6x8xf32>
    %91 = vector.extract_strided_slice %70 {offsets = [0, 72], sizes = [6, 8], strides = [1, 1]} : vector<6x96xf32> to vector<6x8xf32>
    %cst_37 = arith.constant dense<0.000000e+00> : vector<6x6xf32>
    %92 = tpu.matmul %89, %90, %cst_37 {dimension_numbers = #tpu.dot_dimension_numbers<[1], [1], [0], [0], [0, 0, 1, 0], [], []>} : vector<6x8xf32>, vector<6x8xf32>, vector<6x6xf32> -> vector<6x6xf32>
    %cst_38 = arith.constant 0.353553385 : f32
    %93 = vector.broadcast %cst_38 : f32 to vector<6x6xf32>
    %94 = arith.mulf %92, %93 : vector<6x6xf32>
    %95 = arith.addf %94, %40 : vector<6x6xf32>
    %cst_39 = arith.constant dense<0xFF800000> : vector<6xf32>
    %96 = vector.multi_reduction <maximumf>, %95, %cst_39 [1] : vector<6x6xf32> to vector<6xf32>
    %97 = vector.shape_cast %96 : vector<6xf32> to vector<6x1xf32>
    %98 = vector.broadcast %97 : vector<6x1xf32> to vector<6x6xf32>
    %99 = arith.subf %95, %98 : vector<6x6xf32>
    %100 = math.exp %99 : vector<6x6xf32>
    %cst_40 = arith.constant dense<0.000000e+00> : vector<6xf32>
    %101 = vector.multi_reduction <add>, %100, %cst_40 [1] : vector<6x6xf32> to vector<6xf32>
    %102 = vector.shape_cast %101 : vector<6xf32> to vector<6x1xf32>
    %103 = tpu.reciprocal %102 {approx = true} : vector<6x1xf32> -> vector<6x1xf32>
    %104 = vector.broadcast %103 : vector<6x1xf32> to vector<6x6xf32>
    %105 = arith.mulf %100, %104 : vector<6x6xf32>
    %cst_41 = arith.constant dense<0.000000e+00> : vector<6x8xf32>
    %106 = tpu.matmul %105, %91, %cst_41 {dimension_numbers = #tpu.dot_dimension_numbers<[1], [0], [0], [1], [0, 0, 1, 1], [], []>} : vector<6x6xf32>, vector<6x8xf32>, vector<6x8xf32> -> vector<6x8xf32>
    %107 = vector.extract_strided_slice %70 {offsets = [0, 16], sizes = [6, 8], strides = [1, 1]} : vector<6x96xf32> to vector<6x8xf32>
    %108 = vector.extract_strided_slice %70 {offsets = [0, 48], sizes = [6, 8], strides = [1, 1]} : vector<6x96xf32> to vector<6x8xf32>
    %109 = vector.extract_strided_slice %70 {offsets = [0, 80], sizes = [6, 8], strides = [1, 1]} : vector<6x96xf32> to vector<6x8xf32>
    %cst_42 = arith.constant dense<0.000000e+00> : vector<6x6xf32>
    %110 = tpu.matmul %107, %108, %cst_42 {dimension_numbers = #tpu.dot_dimension_numbers<[1], [1], [0], [0], [0, 0, 1, 0], [], []>} : vector<6x8xf32>, vector<6x8xf32>, vector<6x6xf32> -> vector<6x6xf32>
    %cst_43 = arith.constant 0.353553385 : f32
    %111 = vector.broadcast %cst_43 : f32 to vector<6x6xf32>
    %112 = arith.mulf %110, %111 : vector<6x6xf32>
    %113 = arith.addf %112, %40 : vector<6x6xf32>
    %cst_44 = arith.constant dense<0xFF800000> : vector<6xf32>
    %114 = vector.multi_reduction <maximumf>, %113, %cst_44 [1] : vector<6x6xf32> to vector<6xf32>
    %115 = vector.shape_cast %114 : vector<6xf32> to vector<6x1xf32>
    %116 = vector.broadcast %115 : vector<6x1xf32> to vector<6x6xf32>
    %117 = arith.subf %113, %116 : vector<6x6xf32>
    %118 = math.exp %117 : vector<6x6xf32>
    %cst_45 = arith.constant dense<0.000000e+00> : vector<6xf32>
    %119 = vector.multi_reduction <add>, %118, %cst_45 [1] : vector<6x6xf32> to vector<6xf32>
    %120 = vector.shape_cast %119 : vector<6xf32> to vector<6x1xf32>
    %121 = tpu.reciprocal %120 {approx = true} : vector<6x1xf32> -> vector<6x1xf32>
    %122 = vector.broadcast %121 : vector<6x1xf32> to vector<6x6xf32>
    %123 = arith.mulf %118, %122 : vector<6x6xf32>
    %cst_46 = arith.constant dense<0.000000e+00> : vector<6x8xf32>
    %124 = tpu.matmul %123, %109, %cst_46 {dimension_numbers = #tpu.dot_dimension_numbers<[1], [0], [0], [1], [0, 0, 1, 1], [], []>} : vector<6x6xf32>, vector<6x8xf32>, vector<6x8xf32> -> vector<6x8xf32>
    %125 = vector.extract_strided_slice %70 {offsets = [0, 24], sizes = [6, 8], strides = [1, 1]} : vector<6x96xf32> to vector<6x8xf32>
    %126 = vector.extract_strided_slice %70 {offsets = [0, 56], sizes = [6, 8], strides = [1, 1]} : vector<6x96xf32> to vector<6x8xf32>
    %127 = vector.extract_strided_slice %70 {offsets = [0, 88], sizes = [6, 8], strides = [1, 1]} : vector<6x96xf32> to vector<6x8xf32>
    %cst_47 = arith.constant dense<0.000000e+00> : vector<6x6xf32>
    %128 = tpu.matmul %125, %126, %cst_47 {dimension_numbers = #tpu.dot_dimension_numbers<[1], [1], [0], [0], [0, 0, 1, 0], [], []>} : vector<6x8xf32>, vector<6x8xf32>, vector<6x6xf32> -> vector<6x6xf32>
    %cst_48 = arith.constant 0.353553385 : f32
    %129 = vector.broadcast %cst_48 : f32 to vector<6x6xf32>
    %130 = arith.mulf %128, %129 : vector<6x6xf32>
    %131 = arith.addf %130, %40 : vector<6x6xf32>
    %cst_49 = arith.constant dense<0xFF800000> : vector<6xf32>
    %132 = vector.multi_reduction <maximumf>, %131, %cst_49 [1] : vector<6x6xf32> to vector<6xf32>
    %133 = vector.shape_cast %132 : vector<6xf32> to vector<6x1xf32>
    %134 = vector.broadcast %133 : vector<6x1xf32> to vector<6x6xf32>
    %135 = arith.subf %131, %134 : vector<6x6xf32>
    %136 = math.exp %135 : vector<6x6xf32>
    %cst_50 = arith.constant dense<0.000000e+00> : vector<6xf32>
    %137 = vector.multi_reduction <add>, %136, %cst_50 [1] : vector<6x6xf32> to vector<6xf32>
    %138 = vector.shape_cast %137 : vector<6xf32> to vector<6x1xf32>
    %139 = tpu.reciprocal %138 {approx = true} : vector<6x1xf32> -> vector<6x1xf32>
    %140 = vector.broadcast %139 : vector<6x1xf32> to vector<6x6xf32>
    %141 = arith.mulf %136, %140 : vector<6x6xf32>
    %cst_51 = arith.constant dense<0.000000e+00> : vector<6x8xf32>
    %142 = tpu.matmul %141, %127, %cst_51 {dimension_numbers = #tpu.dot_dimension_numbers<[1], [0], [0], [1], [0, 0, 1, 1], [], []>} : vector<6x6xf32>, vector<6x8xf32>, vector<6x8xf32> -> vector<6x8xf32>
    %143 = tpu.concatenate %88, %106, %124, %142 in 1 : vector<6x8xf32>, vector<6x8xf32>, vector<6x8xf32>, vector<6x8xf32> -> vector<6x32xf32>
    %cst_52 = arith.constant dense<0.000000e+00> : vector<6x32xf32>
    %144 = tpu.matmul %143, %53, %cst_52 {dimension_numbers = #tpu.dot_dimension_numbers<[1], [0], [0], [1], [0, 0, 1, 1], [], []>} : vector<6x32xf32>, vector<32x32xf32>, vector<6x32xf32> -> vector<6x32xf32>
    %145 = vector.broadcast %60 : vector<1x32xf32> to vector<6x32xf32>
    %146 = arith.addf %144, %145 : vector<6x32xf32>
    %147 = arith.addf %49, %146 : vector<6x32xf32>
    %cst_53 = arith.constant dense<0.000000e+00> : vector<6xf32>
    %148 = vector.multi_reduction <add>, %147, %cst_53 [1] : vector<6x32xf32> to vector<6xf32>
    %149 = vector.shape_cast %148 : vector<6xf32> to vector<6x1xf32>
    %cst_54 = arith.constant 3.200000e+01 : f32
    %150 = vector.broadcast %cst_54 : f32 to vector<6x1xf32>
    %151 = arith.divf %149, %150 : vector<6x1xf32>
    %152 = vector.broadcast %151 : vector<6x1xf32> to vector<6x32xf32>
    %153 = arith.subf %147, %152 : vector<6x32xf32>
    %154 = arith.mulf %153, %153 : vector<6x32xf32>
    %cst_55 = arith.constant dense<0.000000e+00> : vector<6xf32>
    %155 = vector.multi_reduction <add>, %154, %cst_55 [1] : vector<6x32xf32> to vector<6xf32>
    %156 = vector.shape_cast %155 : vector<6xf32> to vector<6x1xf32>
    %cst_56 = arith.constant 3.200000e+01 : f32
    %157 = vector.broadcast %cst_56 : f32 to vector<6x1xf32>
    %158 = arith.divf %156, %157 : vector<6x1xf32>
    %cst_57 = arith.constant 9.99999974E-6 : f32
    %159 = vector.broadcast %cst_57 : f32 to vector<6x1xf32>
    %160 = arith.addf %158, %159 : vector<6x1xf32>
    %161 = math.rsqrt %160 : vector<6x1xf32>
    %162 = vector.broadcast %161 : vector<6x1xf32> to vector<6x32xf32>
    %163 = arith.mulf %153, %162 : vector<6x32xf32>
    %164 = vector.broadcast %61 : vector<1x32xf32> to vector<6x32xf32>
    %165 = arith.mulf %163, %164 : vector<6x32xf32>
    %166 = vector.broadcast %62 : vector<1x32xf32> to vector<6x32xf32>
    %167 = arith.addf %165, %166 : vector<6x32xf32>
    %168 = vector.extract_strided_slice %55 {offsets = [0, 0], sizes = [32, 64], strides = [1, 1]} : vector<33x64xf32> to vector<32x64xf32>
    %cst_58 = arith.constant dense<0.000000e+00> : vector<6x64xf32>
    %169 = tpu.matmul %167, %168, %cst_58 {dimension_numbers = #tpu.dot_dimension_numbers<[1], [0], [0], [1], [0, 0, 1, 1], [], []>} : vector<6x32xf32>, vector<32x64xf32>, vector<6x64xf32> -> vector<6x64xf32>
    %170 = vector.extract_strided_slice %55 {offsets = [32, 0], sizes = [1, 64], strides = [1, 1]} : vector<33x64xf32> to vector<1x64xf32>
    %171 = vector.broadcast %170 : vector<1x64xf32> to vector<6x64xf32>
    %172 = arith.addf %169, %171 : vector<6x64xf32>
    %cst_59 = arith.constant 0.000000e+00 : f32
    %173 = vector.broadcast %cst_59 : f32 to vector<6x64xf32>
    %174 = arith.maximumf %172, %173 : vector<6x64xf32>
    %cst_60 = arith.constant dense<0.000000e+00> : vector<6x32xf32>
    %175 = tpu.matmul %174, %57, %cst_60 {dimension_numbers = #tpu.dot_dimension_numbers<[1], [0], [0], [1], [0, 0, 1, 1], [], []>} : vector<6x64xf32>, vector<64x32xf32>, vector<6x32xf32> -> vector<6x32xf32>
    %176 = vector.broadcast %63 : vector<1x32xf32> to vector<6x32xf32>
    %177 = arith.addf %175, %176 : vector<6x32xf32>
    %178 = arith.addf %167, %177 : vector<6x32xf32>
    %cst_61 = arith.constant dense<0.000000e+00> : vector<6xf32>
    %179 = vector.multi_reduction <add>, %178, %cst_61 [1] : vector<6x32xf32> to vector<6xf32>
    %180 = vector.shape_cast %179 : vector<6xf32> to vector<6x1xf32>
    %cst_62 = arith.constant 3.200000e+01 : f32
    %181 = vector.broadcast %cst_62 : f32 to vector<6x1xf32>
    %182 = arith.divf %180, %181 : vector<6x1xf32>
    %183 = vector.broadcast %182 : vector<6x1xf32> to vector<6x32xf32>
    %184 = arith.subf %178, %183 : vector<6x32xf32>
    %185 = arith.mulf %184, %184 : vector<6x32xf32>
    %cst_63 = arith.constant dense<0.000000e+00> : vector<6xf32>
    %186 = vector.multi_reduction <add>, %185, %cst_63 [1] : vector<6x32xf32> to vector<6xf32>
    %187 = vector.shape_cast %186 : vector<6xf32> to vector<6x1xf32>
    %cst_64 = arith.constant 3.200000e+01 : f32
    %188 = vector.broadcast %cst_64 : f32 to vector<6x1xf32>
    %189 = arith.divf %187, %188 : vector<6x1xf32>
    %cst_65 = arith.constant 9.99999974E-6 : f32
    %190 = vector.broadcast %cst_65 : f32 to vector<6x1xf32>
    %191 = arith.addf %189, %190 : vector<6x1xf32>
    %192 = math.rsqrt %191 : vector<6x1xf32>
    %193 = vector.broadcast %192 : vector<6x1xf32> to vector<6x32xf32>
    %194 = arith.mulf %184, %193 : vector<6x32xf32>
    %195 = vector.broadcast %64 : vector<1x32xf32> to vector<6x32xf32>
    %196 = arith.mulf %194, %195 : vector<6x32xf32>
    %197 = vector.broadcast %65 : vector<1x32xf32> to vector<6x32xf32>
    %198 = arith.addf %196, %197 : vector<6x32xf32>
    %c1 = arith.constant 1 : index
    %c0_66 = arith.constant 0 : index
    %c0_67 = arith.constant 0 : index
    %199 = vector.load %arg2[%c1, %c0_66, %c0_67] : memref<2x33x96xf32, #tpu.memory_space<vmem>>, vector<1x33x96xf32>
    %200 = vector.shape_cast %199 : vector<1x33x96xf32> to vector<33x96xf32>
    %c1_68 = arith.constant 1 : index
    %c0_69 = arith.constant 0 : index
    %c0_70 = arith.constant 0 : index
    %201 = vector.load %arg3[%c1_68, %c0_69, %c0_70] : memref<2x32x32xf32, #tpu.memory_space<vmem>>, vector<1x32x32xf32>
    %202 = vector.shape_cast %201 : vector<1x32x32xf32> to vector<32x32xf32>
    %c1_71 = arith.constant 1 : index
    %c0_72 = arith.constant 0 : index
    %c0_73 = arith.constant 0 : index
    %203 = vector.load %arg4[%c1_71, %c0_72, %c0_73] : memref<2x33x64xf32, #tpu.memory_space<vmem>>, vector<1x33x64xf32>
    %204 = vector.shape_cast %203 : vector<1x33x64xf32> to vector<33x64xf32>
    %c1_74 = arith.constant 1 : index
    %c0_75 = arith.constant 0 : index
    %c0_76 = arith.constant 0 : index
    %205 = vector.load %arg5[%c1_74, %c0_75, %c0_76] : memref<2x64x32xf32, #tpu.memory_space<vmem>>, vector<1x64x32xf32>
    %206 = vector.shape_cast %205 : vector<1x64x32xf32> to vector<64x32xf32>
    %c1_77 = arith.constant 1 : index
    %c0_78 = arith.constant 0 : index
    %c0_79 = arith.constant 0 : index
    %207 = vector.load %arg6[%c1_77, %c0_78, %c0_79] : memref<3x6x32xf32, #tpu.memory_space<vmem>>, vector<1x6x32xf32>
    %208 = vector.shape_cast %207 : vector<1x6x32xf32> to vector<6x32xf32>
    %209 = vector.extract_strided_slice %208 {offsets = [0, 0], sizes = [1, 32], strides = [1, 1]} : vector<6x32xf32> to vector<1x32xf32>
    %210 = vector.extract_strided_slice %208 {offsets = [1, 0], sizes = [1, 32], strides = [1, 1]} : vector<6x32xf32> to vector<1x32xf32>
    %211 = vector.extract_strided_slice %208 {offsets = [2, 0], sizes = [1, 32], strides = [1, 1]} : vector<6x32xf32> to vector<1x32xf32>
    %212 = vector.extract_strided_slice %208 {offsets = [3, 0], sizes = [1, 32], strides = [1, 1]} : vector<6x32xf32> to vector<1x32xf32>
    %213 = vector.extract_strided_slice %208 {offsets = [4, 0], sizes = [1, 32], strides = [1, 1]} : vector<6x32xf32> to vector<1x32xf32>
    %214 = vector.extract_strided_slice %208 {offsets = [5, 0], sizes = [1, 32], strides = [1, 1]} : vector<6x32xf32> to vector<1x32xf32>
    %215 = vector.extract_strided_slice %200 {offsets = [0, 0], sizes = [32, 96], strides = [1, 1]} : vector<33x96xf32> to vector<32x96xf32>
    %cst_80 = arith.constant dense<0.000000e+00> : vector<6x96xf32>
    %216 = tpu.matmul %198, %215, %cst_80 {dimension_numbers = #tpu.dot_dimension_numbers<[1], [0], [0], [1], [0, 0, 1, 1], [], []>} : vector<6x32xf32>, vector<32x96xf32>, vector<6x96xf32> -> vector<6x96xf32>
    %217 = vector.extract_strided_slice %200 {offsets = [32, 0], sizes = [1, 96], strides = [1, 1]} : vector<33x96xf32> to vector<1x96xf32>
    %218 = vector.broadcast %217 : vector<1x96xf32> to vector<6x96xf32>
    %219 = arith.addf %216, %218 : vector<6x96xf32>
    %220 = vector.extract_strided_slice %219 {offsets = [0, 0], sizes = [6, 8], strides = [1, 1]} : vector<6x96xf32> to vector<6x8xf32>
    %221 = vector.extract_strided_slice %219 {offsets = [0, 32], sizes = [6, 8], strides = [1, 1]} : vector<6x96xf32> to vector<6x8xf32>
    %222 = vector.extract_strided_slice %219 {offsets = [0, 64], sizes = [6, 8], strides = [1, 1]} : vector<6x96xf32> to vector<6x8xf32>
    %cst_81 = arith.constant dense<0.000000e+00> : vector<6x6xf32>
    %223 = tpu.matmul %220, %221, %cst_81 {dimension_numbers = #tpu.dot_dimension_numbers<[1], [1], [0], [0], [0, 0, 1, 0], [], []>} : vector<6x8xf32>, vector<6x8xf32>, vector<6x6xf32> -> vector<6x6xf32>
    %cst_82 = arith.constant 0.353553385 : f32
    %224 = vector.broadcast %cst_82 : f32 to vector<6x6xf32>
    %225 = arith.mulf %223, %224 : vector<6x6xf32>
    %226 = arith.addf %225, %40 : vector<6x6xf32>
    %cst_83 = arith.constant dense<0xFF800000> : vector<6xf32>
    %227 = vector.multi_reduction <maximumf>, %226, %cst_83 [1] : vector<6x6xf32> to vector<6xf32>
    %228 = vector.shape_cast %227 : vector<6xf32> to vector<6x1xf32>
    %229 = vector.broadcast %228 : vector<6x1xf32> to vector<6x6xf32>
    %230 = arith.subf %226, %229 : vector<6x6xf32>
    %231 = math.exp %230 : vector<6x6xf32>
    %cst_84 = arith.constant dense<0.000000e+00> : vector<6xf32>
    %232 = vector.multi_reduction <add>, %231, %cst_84 [1] : vector<6x6xf32> to vector<6xf32>
    %233 = vector.shape_cast %232 : vector<6xf32> to vector<6x1xf32>
    %234 = tpu.reciprocal %233 {approx = true} : vector<6x1xf32> -> vector<6x1xf32>
    %235 = vector.broadcast %234 : vector<6x1xf32> to vector<6x6xf32>
    %236 = arith.mulf %231, %235 : vector<6x6xf32>
    %cst_85 = arith.constant dense<0.000000e+00> : vector<6x8xf32>
    %237 = tpu.matmul %236, %222, %cst_85 {dimension_numbers = #tpu.dot_dimension_numbers<[1], [0], [0], [1], [0, 0, 1, 1], [], []>} : vector<6x6xf32>, vector<6x8xf32>, vector<6x8xf32> -> vector<6x8xf32>
    %238 = vector.extract_strided_slice %219 {offsets = [0, 8], sizes = [6, 8], strides = [1, 1]} : vector<6x96xf32> to vector<6x8xf32>
    %239 = vector.extract_strided_slice %219 {offsets = [0, 40], sizes = [6, 8], strides = [1, 1]} : vector<6x96xf32> to vector<6x8xf32>
    %240 = vector.extract_strided_slice %219 {offsets = [0, 72], sizes = [6, 8], strides = [1, 1]} : vector<6x96xf32> to vector<6x8xf32>
    %cst_86 = arith.constant dense<0.000000e+00> : vector<6x6xf32>
    %241 = tpu.matmul %238, %239, %cst_86 {dimension_numbers = #tpu.dot_dimension_numbers<[1], [1], [0], [0], [0, 0, 1, 0], [], []>} : vector<6x8xf32>, vector<6x8xf32>, vector<6x6xf32> -> vector<6x6xf32>
    %cst_87 = arith.constant 0.353553385 : f32
    %242 = vector.broadcast %cst_87 : f32 to vector<6x6xf32>
    %243 = arith.mulf %241, %242 : vector<6x6xf32>
    %244 = arith.addf %243, %40 : vector<6x6xf32>
    %cst_88 = arith.constant dense<0xFF800000> : vector<6xf32>
    %245 = vector.multi_reduction <maximumf>, %244, %cst_88 [1] : vector<6x6xf32> to vector<6xf32>
    %246 = vector.shape_cast %245 : vector<6xf32> to vector<6x1xf32>
    %247 = vector.broadcast %246 : vector<6x1xf32> to vector<6x6xf32>
    %248 = arith.subf %244, %247 : vector<6x6xf32>
    %249 = math.exp %248 : vector<6x6xf32>
    %cst_89 = arith.constant dense<0.000000e+00> : vector<6xf32>
    %250 = vector.multi_reduction <add>, %249, %cst_89 [1] : vector<6x6xf32> to vector<6xf32>
    %251 = vector.shape_cast %250 : vector<6xf32> to vector<6x1xf32>
    %252 = tpu.reciprocal %251 {approx = true} : vector<6x1xf32> -> vector<6x1xf32>
    %253 = vector.broadcast %252 : vector<6x1xf32> to vector<6x6xf32>
    %254 = arith.mulf %249, %253 : vector<6x6xf32>
    %cst_90 = arith.constant dense<0.000000e+00> : vector<6x8xf32>
    %255 = tpu.matmul %254, %240, %cst_90 {dimension_numbers = #tpu.dot_dimension_numbers<[1], [0], [0], [1], [0, 0, 1, 1], [], []>} : vector<6x6xf32>, vector<6x8xf32>, vector<6x8xf32> -> vector<6x8xf32>
    %256 = vector.extract_strided_slice %219 {offsets = [0, 16], sizes = [6, 8], strides = [1, 1]} : vector<6x96xf32> to vector<6x8xf32>
    %257 = vector.extract_strided_slice %219 {offsets = [0, 48], sizes = [6, 8], strides = [1, 1]} : vector<6x96xf32> to vector<6x8xf32>
    %258 = vector.extract_strided_slice %219 {offsets = [0, 80], sizes = [6, 8], strides = [1, 1]} : vector<6x96xf32> to vector<6x8xf32>
    %cst_91 = arith.constant dense<0.000000e+00> : vector<6x6xf32>
    %259 = tpu.matmul %256, %257, %cst_91 {dimension_numbers = #tpu.dot_dimension_numbers<[1], [1], [0], [0], [0, 0, 1, 0], [], []>} : vector<6x8xf32>, vector<6x8xf32>, vector<6x6xf32> -> vector<6x6xf32>
    %cst_92 = arith.constant 0.353553385 : f32
    %260 = vector.broadcast %cst_92 : f32 to vector<6x6xf32>
    %261 = arith.mulf %259, %260 : vector<6x6xf32>
    %262 = arith.addf %261, %40 : vector<6x6xf32>
    %cst_93 = arith.constant dense<0xFF800000> : vector<6xf32>
    %263 = vector.multi_reduction <maximumf>, %262, %cst_93 [1] : vector<6x6xf32> to vector<6xf32>
    %264 = vector.shape_cast %263 : vector<6xf32> to vector<6x1xf32>
    %265 = vector.broadcast %264 : vector<6x1xf32> to vector<6x6xf32>
    %266 = arith.subf %262, %265 : vector<6x6xf32>
    %267 = math.exp %266 : vector<6x6xf32>
    %cst_94 = arith.constant dense<0.000000e+00> : vector<6xf32>
    %268 = vector.multi_reduction <add>, %267, %cst_94 [1] : vector<6x6xf32> to vector<6xf32>
    %269 = vector.shape_cast %268 : vector<6xf32> to vector<6x1xf32>
    %270 = tpu.reciprocal %269 {approx = true} : vector<6x1xf32> -> vector<6x1xf32>
    %271 = vector.broadcast %270 : vector<6x1xf32> to vector<6x6xf32>
    %272 = arith.mulf %267, %271 : vector<6x6xf32>
    %cst_95 = arith.constant dense<0.000000e+00> : vector<6x8xf32>
    %273 = tpu.matmul %272, %258, %cst_95 {dimension_numbers = #tpu.dot_dimension_numbers<[1], [0], [0], [1], [0, 0, 1, 1], [], []>} : vector<6x6xf32>, vector<6x8xf32>, vector<6x8xf32> -> vector<6x8xf32>
    %274 = vector.extract_strided_slice %219 {offsets = [0, 24], sizes = [6, 8], strides = [1, 1]} : vector<6x96xf32> to vector<6x8xf32>
    %275 = vector.extract_strided_slice %219 {offsets = [0, 56], sizes = [6, 8], strides = [1, 1]} : vector<6x96xf32> to vector<6x8xf32>
    %276 = vector.extract_strided_slice %219 {offsets = [0, 88], sizes = [6, 8], strides = [1, 1]} : vector<6x96xf32> to vector<6x8xf32>
    %cst_96 = arith.constant dense<0.000000e+00> : vector<6x6xf32>
    %277 = tpu.matmul %274, %275, %cst_96 {dimension_numbers = #tpu.dot_dimension_numbers<[1], [1], [0], [0], [0, 0, 1, 0], [], []>} : vector<6x8xf32>, vector<6x8xf32>, vector<6x6xf32> -> vector<6x6xf32>
    %cst_97 = arith.constant 0.353553385 : f32
    %278 = vector.broadcast %cst_97 : f32 to vector<6x6xf32>
    %279 = arith.mulf %277, %278 : vector<6x6xf32>
    %280 = arith.addf %279, %40 : vector<6x6xf32>
    %cst_98 = arith.constant dense<0xFF800000> : vector<6xf32>
    %281 = vector.multi_reduction <maximumf>, %280, %cst_98 [1] : vector<6x6xf32> to vector<6xf32>
    %282 = vector.shape_cast %281 : vector<6xf32> to vector<6x1xf32>
    %283 = vector.broadcast %282 : vector<6x1xf32> to vector<6x6xf32>
    %284 = arith.subf %280, %283 : vector<6x6xf32>
    %285 = math.exp %284 : vector<6x6xf32>
    %cst_99 = arith.constant dense<0.000000e+00> : vector<6xf32>
    %286 = vector.multi_reduction <add>, %285, %cst_99 [1] : vector<6x6xf32> to vector<6xf32>
    %287 = vector.shape_cast %286 : vector<6xf32> to vector<6x1xf32>
    %288 = tpu.reciprocal %287 {approx = true} : vector<6x1xf32> -> vector<6x1xf32>
    %289 = vector.broadcast %288 : vector<6x1xf32> to vector<6x6xf32>
    %290 = arith.mulf %285, %289 : vector<6x6xf32>
    %cst_100 = arith.constant dense<0.000000e+00> : vector<6x8xf32>
    %291 = tpu.matmul %290, %276, %cst_100 {dimension_numbers = #tpu.dot_dimension_numbers<[1], [0], [0], [1], [0, 0, 1, 1], [], []>} : vector<6x6xf32>, vector<6x8xf32>, vector<6x8xf32> -> vector<6x8xf32>
    %292 = tpu.concatenate %237, %255, %273, %291 in 1 : vector<6x8xf32>, vector<6x8xf32>, vector<6x8xf32>, vector<6x8xf32> -> vector<6x32xf32>
    %cst_101 = arith.constant dense<0.000000e+00> : vector<6x32xf32>
    %293 = tpu.matmul %292, %202, %cst_101 {dimension_numbers = #tpu.dot_dimension_numbers<[1], [0], [0], [1], [0, 0, 1, 1], [], []>} : vector<6x32xf32>, vector<32x32xf32>, vector<6x32xf32> -> vector<6x32xf32>
    %294 = vector.broadcast %209 : vector<1x32xf32> to vector<6x32xf32>
    %295 = arith.addf %293, %294 : vector<6x32xf32>
    %296 = arith.addf %198, %295 : vector<6x32xf32>
    %cst_102 = arith.constant dense<0.000000e+00> : vector<6xf32>
    %297 = vector.multi_reduction <add>, %296, %cst_102 [1] : vector<6x32xf32> to vector<6xf32>
    %298 = vector.shape_cast %297 : vector<6xf32> to vector<6x1xf32>
    %cst_103 = arith.constant 3.200000e+01 : f32
    %299 = vector.broadcast %cst_103 : f32 to vector<6x1xf32>
    %300 = arith.divf %298, %299 : vector<6x1xf32>
    %301 = vector.broadcast %300 : vector<6x1xf32> to vector<6x32xf32>
    %302 = arith.subf %296, %301 : vector<6x32xf32>
    %303 = arith.mulf %302, %302 : vector<6x32xf32>
    %cst_104 = arith.constant dense<0.000000e+00> : vector<6xf32>
    %304 = vector.multi_reduction <add>, %303, %cst_104 [1] : vector<6x32xf32> to vector<6xf32>
    %305 = vector.shape_cast %304 : vector<6xf32> to vector<6x1xf32>
    %cst_105 = arith.constant 3.200000e+01 : f32
    %306 = vector.broadcast %cst_105 : f32 to vector<6x1xf32>
    %307 = arith.divf %305, %306 : vector<6x1xf32>
    %cst_106 = arith.constant 9.99999974E-6 : f32
    %308 = vector.broadcast %cst_106 : f32 to vector<6x1xf32>
    %309 = arith.addf %307, %308 : vector<6x1xf32>
    %310 = math.rsqrt %309 : vector<6x1xf32>
    %311 = vector.broadcast %310 : vector<6x1xf32> to vector<6x32xf32>
    %312 = arith.mulf %302, %311 : vector<6x32xf32>
    %313 = vector.broadcast %210 : vector<1x32xf32> to vector<6x32xf32>
    %314 = arith.mulf %312, %313 : vector<6x32xf32>
    %315 = vector.broadcast %211 : vector<1x32xf32> to vector<6x32xf32>
    %316 = arith.addf %314, %315 : vector<6x32xf32>
    %317 = vector.extract_strided_slice %204 {offsets = [0, 0], sizes = [32, 64], strides = [1, 1]} : vector<33x64xf32> to vector<32x64xf32>
    %cst_107 = arith.constant dense<0.000000e+00> : vector<6x64xf32>
    %318 = tpu.matmul %316, %317, %cst_107 {dimension_numbers = #tpu.dot_dimension_numbers<[1], [0], [0], [1], [0, 0, 1, 1], [], []>} : vector<6x32xf32>, vector<32x64xf32>, vector<6x64xf32> -> vector<6x64xf32>
    %319 = vector.extract_strided_slice %204 {offsets = [32, 0], sizes = [1, 64], strides = [1, 1]} : vector<33x64xf32> to vector<1x64xf32>
    %320 = vector.broadcast %319 : vector<1x64xf32> to vector<6x64xf32>
    %321 = arith.addf %318, %320 : vector<6x64xf32>
    %cst_108 = arith.constant 0.000000e+00 : f32
    %322 = vector.broadcast %cst_108 : f32 to vector<6x64xf32>
    %323 = arith.maximumf %321, %322 : vector<6x64xf32>
    %cst_109 = arith.constant dense<0.000000e+00> : vector<6x32xf32>
    %324 = tpu.matmul %323, %206, %cst_109 {dimension_numbers = #tpu.dot_dimension_numbers<[1], [0], [0], [1], [0, 0, 1, 1], [], []>} : vector<6x64xf32>, vector<64x32xf32>, vector<6x32xf32> -> vector<6x32xf32>
    %325 = vector.broadcast %212 : vector<1x32xf32> to vector<6x32xf32>
    %326 = arith.addf %324, %325 : vector<6x32xf32>
    %327 = arith.addf %316, %326 : vector<6x32xf32>
    %cst_110 = arith.constant dense<0.000000e+00> : vector<6xf32>
    %328 = vector.multi_reduction <add>, %327, %cst_110 [1] : vector<6x32xf32> to vector<6xf32>
    %329 = vector.shape_cast %328 : vector<6xf32> to vector<6x1xf32>
    %cst_111 = arith.constant 3.200000e+01 : f32
    %330 = vector.broadcast %cst_111 : f32 to vector<6x1xf32>
    %331 = arith.divf %329, %330 : vector<6x1xf32>
    %332 = vector.broadcast %331 : vector<6x1xf32> to vector<6x32xf32>
    %333 = arith.subf %327, %332 : vector<6x32xf32>
    %334 = arith.mulf %333, %333 : vector<6x32xf32>
    %cst_112 = arith.constant dense<0.000000e+00> : vector<6xf32>
    %335 = vector.multi_reduction <add>, %334, %cst_112 [1] : vector<6x32xf32> to vector<6xf32>
    %336 = vector.shape_cast %335 : vector<6xf32> to vector<6x1xf32>
    %cst_113 = arith.constant 3.200000e+01 : f32
    %337 = vector.broadcast %cst_113 : f32 to vector<6x1xf32>
    %338 = arith.divf %336, %337 : vector<6x1xf32>
    %cst_114 = arith.constant 9.99999974E-6 : f32
    %339 = vector.broadcast %cst_114 : f32 to vector<6x1xf32>
    %340 = arith.addf %338, %339 : vector<6x1xf32>
    %341 = math.rsqrt %340 : vector<6x1xf32>
    %342 = vector.broadcast %341 : vector<6x1xf32> to vector<6x32xf32>
    %343 = arith.mulf %333, %342 : vector<6x32xf32>
    %344 = vector.broadcast %213 : vector<1x32xf32> to vector<6x32xf32>
    %345 = arith.mulf %343, %344 : vector<6x32xf32>
    %346 = vector.broadcast %214 : vector<1x32xf32> to vector<6x32xf32>
    %347 = arith.addf %345, %346 : vector<6x32xf32>
    %348 = vector.extract_strided_slice %42 {offsets = [1, 0], sizes = [1, 32], strides = [1, 1]} : vector<6x32xf32> to vector<1x32xf32>
    %349 = vector.extract_strided_slice %42 {offsets = [2, 0], sizes = [1, 32], strides = [1, 1]} : vector<6x32xf32> to vector<1x32xf32>
    %cst_115 = arith.constant dense<0.000000e+00> : vector<6xf32>
    %350 = vector.multi_reduction <add>, %347, %cst_115 [1] : vector<6x32xf32> to vector<6xf32>
    %351 = vector.shape_cast %350 : vector<6xf32> to vector<6x1xf32>
    %cst_116 = arith.constant 3.200000e+01 : f32
    %352 = vector.broadcast %cst_116 : f32 to vector<6x1xf32>
    %353 = arith.divf %351, %352 : vector<6x1xf32>
    %354 = vector.broadcast %353 : vector<6x1xf32> to vector<6x32xf32>
    %355 = arith.subf %347, %354 : vector<6x32xf32>
    %356 = arith.mulf %355, %355 : vector<6x32xf32>
    %cst_117 = arith.constant dense<0.000000e+00> : vector<6xf32>
    %357 = vector.multi_reduction <add>, %356, %cst_117 [1] : vector<6x32xf32> to vector<6xf32>
    %358 = vector.shape_cast %357 : vector<6xf32> to vector<6x1xf32>
    %cst_118 = arith.constant 3.200000e+01 : f32
    %359 = vector.broadcast %cst_118 : f32 to vector<6x1xf32>
    %360 = arith.divf %358, %359 : vector<6x1xf32>
    %cst_119 = arith.constant 9.99999974E-6 : f32
    %361 = vector.broadcast %cst_119 : f32 to vector<6x1xf32>
    %362 = arith.addf %360, %361 : vector<6x1xf32>
    %363 = math.rsqrt %362 : vector<6x1xf32>
    %364 = vector.broadcast %363 : vector<6x1xf32> to vector<6x32xf32>
    %365 = arith.mulf %355, %364 : vector<6x32xf32>
    %366 = vector.broadcast %348 : vector<1x32xf32> to vector<6x32xf32>
    %367 = arith.mulf %365, %366 : vector<6x32xf32>
    %368 = vector.broadcast %349 : vector<1x32xf32> to vector<6x32xf32>
    %369 = arith.addf %367, %368 : vector<6x32xf32>
    %370 = vector.extract_strided_slice %369 {offsets = [0, 0], sizes = [2, 32], strides = [1, 1]} : vector<6x32xf32> to vector<2x32xf32>
    %371 = vector.extract_strided_slice %369 {offsets = [2, 0], sizes = [2, 32], strides = [1, 1]} : vector<6x32xf32> to vector<2x32xf32>
    %372 = arith.maximumf %370, %371 : vector<2x32xf32>
    %373 = vector.extract_strided_slice %369 {offsets = [4, 0], sizes = [2, 32], strides = [1, 1]} : vector<6x32xf32> to vector<2x32xf32>
    %374 = arith.maximumf %372, %373 : vector<2x32xf32>
    %375 = vector.extract_strided_slice %0 {offsets = [0, 0], sizes = [2, 4], strides = [1, 1]} : vector<6x4xf32> to vector<2x4xf32>
    %376 = vector.extract_strided_slice %0 {offsets = [2, 0], sizes = [2, 4], strides = [1, 1]} : vector<6x4xf32> to vector<2x4xf32>
    %377 = arith.addf %375, %376 : vector<2x4xf32>
    %378 = vector.extract_strided_slice %0 {offsets = [4, 0], sizes = [2, 4], strides = [1, 1]} : vector<6x4xf32> to vector<2x4xf32>
    %379 = arith.addf %377, %378 : vector<2x4xf32>
    %380 = vector.extract_strided_slice %0 {offsets = [4, 0], sizes = [2, 4], strides = [1, 1]} : vector<6x4xf32> to vector<2x4xf32>
    %c0_120 = arith.constant 0 : index
    %c0_121 = arith.constant 0 : index
    %381 = vector.load %arg7[%c0_120, %c0_121] : memref<41x96xf32, #tpu.memory_space<vmem>>, vector<41x96xf32>
    %382 = vector.extract_strided_slice %381 {offsets = [0, 0], sizes = [32, 96], strides = [1, 1]} : vector<41x96xf32> to vector<32x96xf32>
    %cst_122 = arith.constant dense<0.000000e+00> : vector<2x96xf32>
    %383 = tpu.matmul %374, %382, %cst_122 {dimension_numbers = #tpu.dot_dimension_numbers<[1], [0], [0], [1], [0, 0, 1, 1], [], []>} : vector<2x32xf32>, vector<32x96xf32>, vector<2x96xf32> -> vector<2x96xf32>
    %384 = vector.extract_strided_slice %381 {offsets = [32, 0], sizes = [4, 96], strides = [1, 1]} : vector<41x96xf32> to vector<4x96xf32>
    %cst_123 = arith.constant dense<0.000000e+00> : vector<2x96xf32>
    %385 = tpu.matmul %379, %384, %cst_123 {dimension_numbers = #tpu.dot_dimension_numbers<[1], [0], [0], [1], [0, 0, 1, 1], [], []>} : vector<2x4xf32>, vector<4x96xf32>, vector<2x96xf32> -> vector<2x96xf32>
    %386 = arith.addf %383, %385 : vector<2x96xf32>
    %387 = vector.extract_strided_slice %381 {offsets = [36, 0], sizes = [4, 96], strides = [1, 1]} : vector<41x96xf32> to vector<4x96xf32>
    %cst_124 = arith.constant dense<0.000000e+00> : vector<2x96xf32>
    %388 = tpu.matmul %380, %387, %cst_124 {dimension_numbers = #tpu.dot_dimension_numbers<[1], [0], [0], [1], [0, 0, 1, 1], [], []>} : vector<2x4xf32>, vector<4x96xf32>, vector<2x96xf32> -> vector<2x96xf32>
    %389 = arith.addf %386, %388 : vector<2x96xf32>
    %390 = vector.extract_strided_slice %381 {offsets = [40, 0], sizes = [1, 96], strides = [1, 1]} : vector<41x96xf32> to vector<1x96xf32>
    %391 = vector.broadcast %390 : vector<1x96xf32> to vector<2x96xf32>
    %392 = arith.addf %389, %391 : vector<2x96xf32>
    %cst_125 = arith.constant 0.000000e+00 : f32
    %393 = vector.broadcast %cst_125 : f32 to vector<2x96xf32>
    %394 = arith.maximumf %392, %393 : vector<2x96xf32>
    %c0_126 = arith.constant 0 : index
    %c0_127 = arith.constant 0 : index
    %395 = vector.load %arg8[%c0_126, %c0_127] : memref<97x16xf32, #tpu.memory_space<vmem>>, vector<97x16xf32>
    %396 = vector.extract_strided_slice %395 {offsets = [0, 0], sizes = [96, 16], strides = [1, 1]} : vector<97x16xf32> to vector<96x16xf32>
    %cst_128 = arith.constant dense<0.000000e+00> : vector<2x16xf32>
    %397 = tpu.matmul %394, %396, %cst_128 {dimension_numbers = #tpu.dot_dimension_numbers<[1], [0], [0], [1], [0, 0, 1, 1], [], []>} : vector<2x96xf32>, vector<96x16xf32>, vector<2x16xf32> -> vector<2x16xf32>
    %398 = vector.extract_strided_slice %395 {offsets = [96, 0], sizes = [1, 16], strides = [1, 1]} : vector<97x16xf32> to vector<1x16xf32>
    %399 = vector.broadcast %398 : vector<1x16xf32> to vector<2x16xf32>
    %400 = arith.addf %397, %399 : vector<2x16xf32>
    %cst_129 = arith.constant dense<0xFF800000> : vector<2xf32>
    %401 = vector.multi_reduction <maximumf>, %400, %cst_129 [1] : vector<2x16xf32> to vector<2xf32>
    %402 = vector.shape_cast %401 : vector<2xf32> to vector<2x1xf32>
    %403 = vector.broadcast %402 : vector<2x1xf32> to vector<2x16xf32>
    %404 = arith.subf %400, %403 : vector<2x16xf32>
    %405 = math.exp %404 : vector<2x16xf32>
    %cst_130 = arith.constant dense<0.000000e+00> : vector<2xf32>
    %406 = vector.multi_reduction <add>, %405, %cst_130 [1] : vector<2x16xf32> to vector<2xf32>
    %407 = vector.shape_cast %406 : vector<2xf32> to vector<2x1xf32>
    %408 = math.log %407 : vector<2x1xf32>
    %409 = arith.addf %402, %408 : vector<2x1xf32>
    %410 = vector.broadcast %409 : vector<2x1xf32> to vector<2x16xf32>
    %411 = arith.subf %400, %410 : vector<2x16xf32>
    %c0_131 = arith.constant 0 : index
    %c0_132 = arith.constant 0 : index
    %412 = vector.load %arg9[%c0_131, %c0_132] : memref<2x16xf32, #tpu.memory_space<vmem>>, vector<2x16xf32>
    tpu.vector_store %arg9[%c0_131, %c0_132], %411 {strides = array<i32>} : memref<2x16xf32, #tpu.memory_space<vmem>>, vector<2x16xf32>,
    return
  }
}

</mosaic_0001>

<bundles_post_ra>
// kernel: transformer_model3_forward.1
= control target key start
LH: loop header
LB: loop body
LE: loop exit
PB: predicated region body
PF: predicated region fallthrough
CT: control target
= control target key end

     0   :  { %vm1880_vm0 = vcmask 1043456   ;;  %vm1879_vm1 = vcmask 31744   ;;  %s1869_s0 = inlined_call_operand.vmem [shape: f32[6,4], index: 0, kind: input, shape index: {}]   ;;  %s1870_s1 = inlined_call_operand.vmem [shape: f32[4,32], index: 1, kind: input, shape index: {}]   ;;  %s1871_s2 = inlined_call_operand.vmem [shape: f32[2,33,96], index: 2, kind: input, shape index: {}]   ;;  %s1872_s3 = inlined_call_operand.vmem [shape: f32[2,32,32], index: 3, kind: input, shape index: {}]   ;;  %s1873_s4 = inlined_call_operand.vmem [shape: f32[2,33,64], index: 4, kind: input, shape index: {}]   ;;  %s1874_s5 = inlined_call_operand.vmem [shape: f32[2,64,32], index: 5, kind: input, shape index: {}]   ;;  %s1875_s6 = inlined_call_operand.vmem [shape: f32[3,6,32], index: 6, kind: input, shape index: {}]   ;;  %s1876_s7 = inlined_call_operand.vmem [shape: f32[41,96], index: 7, kind: input, shape index: {}]   ;;  %s1877_s8 = inlined_call_operand.vmem [shape: f32[97,16], index: 8, kind: input, shape index: {}]   ;;  %s1878_s9 = inlined_call_operand.hbm [shape: f32[2,16], index: 9, kind: output, shape index: {}]  }
   0x1   :  { %v64_v0 = vld [vmem:[%s1870_s1] sm:$0xf]  ;;  %v98_v2 = vld [vmem:[%s1871_s2 + $0x18] sm:$0xff] }
   0x2   :  { %v33_v1 = vld [vmem:[%s1869_s0] sm:$0x3f]  ;;  %1229 = vmatpush.msk.msra.mxu0 %vm1880_vm0, %v64_v0  ;;  %135 = vmatpush.msra.mxu1 %v98_v2 }
   0x3   :  { %1230 = vmatmul.msk.f32.vlgmr.msra.gmra.mxu0 %vm1879_vm1, %v33_v1 }
   0x4   :  { %14 = vsyncpa [#allocation3], 0  ;;  %v97_v3 = vld [vmem:[%s1871_s2 + $0x10] sm:$0xff]  ;;  %v96_v4 = vld [vmem:[%s1871_s2 + $0x8] sm:$0xff]  ;;  %vm1881_vm2 = vcmask 261120   ;;  %s1399_s24 = smov 112   ;;  %v34_v21 = vlaneseq }
   0x5   :  { %136 = vmatpush.msra.mxu1 %v97_v3  ;;  %v95_v5 = vld [vmem:[%s1871_s2] sm:$0xff]  ;;  %v1228_v6 = vld [vmem:[%s1875_s6 + $0x10] sm:$0x3f]  ;;  %s1400_s25 = smov 120   ;;  %s1401_s26 = smov 96   ;;  %vm1882_vm3 = vcmask 64512  }
   0x6   :  { %v65_v7 = vperm.slane %v1228_v6, 0  ;;  %v1317_v11 = vld [vmem:[%s1871_s2 + $0x20] ss:$0 sm:$0xff]  ;;  %s1402_s27 = smov 72   ;;  %s1403_s28 = smov 80   ;;  %v35_v22 = vshrl.u32 %v34_v21, 7 }
   0x7   :  { %137 = vmatpush.msra.mxu1 %v96_v4  ;;  %s1404_s29 = smov 88   ;;  %s1405_s30 = smov 104   ;;  %v37_v23 = vand.u32 127, %v34_v21  ;;  %v1406_v25 = vmov -1e+30   ;;  %v102_v21 = vld [vmem:[%s1872_s3 + $0x10] sm:$0xff] }
   0x8   :  { %vm45_vm4 = vcmp.ge.s32.totalorder %v35_v22, 2  ;;  %vm46_vm5 = vcmp.lt.s32.totalorder %v35_v22, 4  ;;  %vm53_vm8 = vcmp.ge.s32.totalorder %v35_v22, 4  ;;  %vm54_vm9 = vcmp.lt.s32.totalorder %v35_v22, 6  ;;  %s1407_s10 = smov 64   ;;  %s1408_s11 = smov 48  }
   0x9   :  { %138 = vmatpush.msra.mxu1 %v95_v5  ;;  %vm47_vm6 = vmand %vm45_vm4, %vm46_vm5  ;;  %vm48_vm7 = vcmp.ge.s32.totalorder %v37_v23, 2  ;;  %vm39_vm10 = vcmp.lt.s32.totalorder %v35_v22, 2  ;;  %vm43_vm11 = vcmp.lt.s32.totalorder %v37_v23, 2  ;;  %vm50_vm13 = vcmp.lt.s32.totalorder %v37_v23, 4  ;;  %s1409_s12 = smov 56   ;;  %s1410_s13 = smov 40  }
   0xa   :  { %vm49_vm12 = vmand %vm47_vm6, %vm48_vm7  ;;  %vm56_vm15 = vcmp.ge.s32.totalorder %v37_v23, 4  ;;  %vm173_vm7 = vcmask 46080   ;;  %s1411_s14 = smov 8   ;;  %s1883_s15 = smov 16   ;;  %v101_v22 = vld [vmem:[%s1872_s3 + $0x8] sm:$0xff] }
   0xb   :  { %vm55_vm14 = vmand %vm53_vm8, %vm54_vm9  ;;  %s1884_s16 = smov 24   ;;  %vm433_vm8 = vcmask 195584   ;;  %vm1886_vm9 = vcmask 261120  }
   0xc   :  { %vm44_vm1 = vmand %vm39_vm10, %vm43_vm11  ;;  %vm460_vm10 = vcmask 259072  }
   0xd   :  { %vm51_vm0 = vmand %vm49_vm12, %vm50_vm13 }
   0xe   :  { %vm52_vm4 = vmor %vm44_vm1, %vm51_vm0  ;;  %vm191_vm0 = vcmask 1045504   ;;  %vm187_vm1 = vcmask 48128  }
  0x80   :  { %v91_v8 = vpop.f32.mrf.mxu0 }
  0x81   :  { %v1489_v9 = vadd.f32 %v91_v8, %v65_v7 }
  0x83   :  { %v94_v10 = vmax.f32 %v1489_v9, 0.0 }
  0x85   :  { %1231 = vmatmul.msk.f32.vlgmr.msra.gmra.mxu1 %vm1881_vm2, %v94_v10  ;;  %vm57_vm2 = vmand %vm55_vm14, %vm56_vm15 }
  0x86   :  { %vm1887_vm15 = vmmov %vm1886_vm9 }
 0x102   :  { %v140_v12 = vpop.f32.mrf.mxu1 }
 0x103   :  { %v1498_v13 = vadd.f32 %v1317_v11, %v140_v12 }
 0x105   :  { %282 = vrot.lane.b32.xlu2 %v1498_v13, %s1399_s24  ;;  %214 = vrot.lane.b32.xlu1 %v1498_v13, %s1400_s25 }
 0x106   :  { %144 = vrot.lane.b32.xlu0 %v1498_v13, %s1401_s26 }
 0x10d   :  { %352 = vrot.lane.b32.xlu2 %v1498_v13, %s1402_s27  ;;  %284 = vrot.lane.b32.xlu1 %v1498_v13, %s1403_s28 }
 0x10e   :  { %216 = vrot.lane.b32.xlu0 %v1498_v13, %s1404_s29 }
 0x116   :  { %350 = vrot.lane.b32.xlu0 %v1498_v13, %s1405_s30 }
 0x15f   :  { %v283_v16 = vpop.permute.xlu2 %282 }
 0x167   :  { %v353_v19 = vpop.permute.xlu2 %352 }
 0x177   :  { %v215_v14 = vpop.permute.xlu1 %214 }
 0x178   :  { %v145_v15 = vpop.permute.xlu0 %144 }
 0x179   :  { %1232 = vmatpush.xpose.msk.msrb.mxu1 %vm1882_vm3, %v145_v15 }
 0x17c   :  { %1233 = vmatmul.msk.f32.vlgmr.msrb.gmra.mxu1 %vm1882_vm3, %v1498_v13 }
 0x17f   :  { %v285_v17 = vpop.permute.xlu1 %284 }
 0x180   :  { %v217_v18 = vpop.permute.xlu0 %216 }
 0x181   :  { %1236 = vmatpush.xpose.msk.msrb.mxu0 %vm1882_vm3, %v217_v18 }
 0x184   :  { %1237 = vmatmul.msk.f32.vlgmr.msrb.gmra.mxu0 %vm1882_vm3, %v215_v14 }
 0x185   :  { %1240 = vmatpush.xpose.msk.msra.mxu0 %vm1882_vm3, %v285_v17 }
 0x188   :  { %v351_v20 = vpop.permute.xlu0 %350 }
 0x189   :  { %1244 = vmatpush.xpose.msk.msrb.mxu0 %vm1882_vm3, %v353_v19 }
 0x18c   :  { %1241 = vmatmul.msk.f32.vlgmr.msra.gmra.mxu0 %vm1882_vm3, %v283_v16 }
 0x194   :  { %1245 = vmatmul.msk.f32.vlgmr.msrb.gmra.mxu0 %vm1882_vm3, %v351_v20  ;;  %vm58_vm3 = vcmp.lt.s32.totalorder %v37_v23, 6  ;;  %v103_v20 = vld [vmem:[%s1872_s3 + $0x18] sm:$0xff]  ;;  %v100_v23 = vld [vmem:[%s1872_s3] sm:$0xff] }
 0x195   :  { %vm59_vm5 = vmand %vm57_vm2, %vm58_vm3  ;;  %451 = vmatpush.msra.mxu2 %v103_v20  ;;  %vm1885_vm2 = vcmask 64512   ;;  %vm431_vm3 = vcmask 130048  }
 0x196   :  { %vm60_vm6 = vmor %vm52_vm4, %vm59_vm5  ;;  %vm520_vm4 = vcmask 523264  }
 0x197   :  { %v1523_v26 = vsel %vm60_vm6, 0.0, %v1406_v25  ;;  %452 = vmatpush.msra.mxu2 %v102_v21 }
 0x199   :  { %453 = vmatpush.msra.mxu2 %v101_v22 }
 0x19b   :  { %454 = vmatpush.msra.mxu2 %v100_v23 }
 0x1f9   :  { %v168_v24 = vpop.f32.mrf.mxu1 }
 0x1fa   :  { %v171_v27 = vmul.f32 0.35355338, %v168_v24 }
 0x1fc   :  { %v172_v28 = vadd.f32 %v171_v27, %v1523_v26 }
 0x1fe   :  { %v174_v29 = vsel %vm173_vm7, %v172_v28, -inf }
 0x1ff   :  { %175 = vmax.xlane.f32.xlu1 %v174_v29 }
 0x201   :  { %v239_v30 = vpop.f32.mrf.mxu0 }
 0x202   :  { %v242_v31 = vmul.f32 0.35355338, %v239_v30 }
 0x204   :  { %v243_v32 = vadd.f32 %v242_v31, %v1523_v26  ;;  %v1575_v31 = vld [vmem:[%s1875_s6] sm:$0x3f] }
 0x206   :  { %v244_v33 = vsel %vm173_vm7, %v243_v32, -inf }
 0x207   :  { %245 = vmax.xlane.f32.xlu2 %v244_v33 }
 0x209   :  { %v307_v34 = vpop.f32.mrf.mxu0 }
 0x20a   :  { %v310_v35 = vmul.f32 0.35355338, %v307_v34 }
 0x20c   :  { %v311_v36 = vadd.f32 %v310_v35, %v1523_v26 }
 0x20e   :  { %v312_v37 = vsel %vm173_vm7, %v311_v36, -inf }
 0x20f   :  { %313 = vmax.xlane.f32.xlu2 %v312_v37  ;;  %v1414_v37 = vmov 32.0  }
 0x211   :  { %v375_v38 = vpop.f32.mrf.mxu0 }
 0x212   :  { %v378_v39 = vmul.f32 0.35355338, %v375_v38 }
 0x214   :  { %v379_v40 = vadd.f32 %v378_v39, %v1523_v26 }
 0x216   :  { %v380_v41 = vsel %vm173_vm7, %v379_v40, -inf }
 0x217   :  { %381 = vmax.xlane.f32.xlu0 %v380_v41 }
 0x22b   :  { %185 = vrot.lane.b32.xlu0 %v1498_v13, %s1407_s10 }
 0x233   :  { %323 = vrot.lane.b32.xlu0 %v1498_v13, %s1408_s11 }
 0x272   :  { %v176_v42 = vpop.xlane.xlu1 %175 }
 0x273   :  { %v177_v43 = vsub.f32 %v172_v28, %v176_v42 }
 0x275   :  { %v178_v44 = vmul.f32 1.442695, %v177_v43 }
 0x277   :  { %1323 = vpow2.f32 %v178_v44 }
 0x27a   :  { %v246_v45 = vpop.xlane.xlu2 %245 }
 0x27b   :  { %v247_v46 = vsub.f32 %v243_v32, %v246_v45  ;;  %v435_v32 = vperm.slane %v1575_v31, 0 }
 0x27d   :  { %v1324_v47 = vpop.eup %1323  ;;  %v248_v48 = vmul.f32 1.442695, %v247_v46 }
 0x27e   :  { %v180_v49 = vsel %vm173_vm7, %v1324_v47, 0.0 }
 0x27f   :  { %1325 = vpow2.f32 %v248_v48  ;;  %181 = vadd.xlane.f32.xlu1 %v180_v49  ;;  %v106_v48 = vld [vmem:[%s1873_s4 + $0x10] sm:$0xff]  ;;  %v105_v49 = vld [vmem:[%s1873_s4 + $0x8] sm:$0xff] }
 0x282   :  { %v314_v50 = vpop.xlane.xlu2 %313 }
 0x283   :  { %v315_v51 = vsub.f32 %v311_v36, %v314_v50  ;;  %v104_v50 = vld [vmem:[%s1873_s4] sm:$0xff] }
 0x285   :  { %v1326_v52 = vpop.eup %1325  ;;  %v316_v53 = vmul.f32 1.442695, %v315_v51  ;;  %v116_v51 = vld [vmem:[%s1874_s5 + $0x38] sm:$0xff] }
 0x286   :  { %v250_v54 = vsel %vm173_vm7, %v1326_v52, 0.0  ;;  %532 = vmatpush.msra.mxu0 %v116_v51 }
 0x287   :  { %1327 = vpow2.f32 %v316_v53  ;;  %251 = vadd.xlane.f32.xlu2 %v250_v54  ;;  %v114_v53 = vld [vmem:[%s1874_s5 + $0x28] sm:$0xff] }
 0x28a   :  { %v382_v55 = vpop.xlane.xlu0 %381 }
 0x28b   :  { %v383_v56 = vsub.f32 %v379_v40, %v382_v55 }
 0x28d   :  { %v1328_v57 = vpop.eup %1327  ;;  %v384_v58 = vmul.f32 1.442695, %v383_v56  ;;  %v113_v56 = vld [vmem:[%s1874_s5 + $0x20] sm:$0xff] }
 0x28e   :  { %v318_v59 = vsel %vm173_vm7, %v1328_v57, 0.0 }
 0x28f   :  { %1329 = vpow2.f32 %v384_v58  ;;  %319 = vadd.xlane.f32.xlu1 %v318_v59  ;;  %v112_v58 = vld [vmem:[%s1874_s5 + $0x18] sm:$0xff] }
 0x295   :  { %v1330_v60 = vpop.eup %1329 }
 0x296   :  { %v386_v61 = vsel %vm173_vm7, %v1330_v60, 0.0 }
 0x297   :  { %387 = vadd.xlane.f32.xlu1 %v386_v61 }
 0x29d   :  { %v186_v62 = vpop.permute.xlu0 %185 }
 0x29e   :  { %1234 = vmatpush.msk.msra.mxu3 %vm191_vm0, %v186_v62 }
 0x29f   :  { %255 = vrot.lane.b32.xlu2 %v1498_v13, %s1409_s12 }
 0x2a5   :  { %v324_v63 = vpop.permute.xlu0 %323 }
 0x2a6   :  { %1242 = vmatpush.msk.msra.mxu1 %vm191_vm0, %v324_v63 }
 0x2b0   :  { %391 = vrot.lane.b32.xlu1 %v1498_v13, %s1410_s13 }
 0x2f2   :  { %v182_v0 = vpop.xlane.xlu1 %181 }
 0x2f3   :  { %1331 = vrcp.f32 %v182_v0 }
 0x2f9   :  { %v1332_v1 = vpop.eup %1331 }
 0x2fa   :  { %v252_v2 = vpop.xlane.xlu2 %251  ;;  %v184_v3 = vmul.f32 %v1332_v1, %v1324_v47  ;;  %v490_v1 = vperm.slane %v1575_v31, 1 }
 0x2fb   :  { %1333 = vrcp.f32 %v252_v2 }
 0x2fc   :  { %1235 = vmatmul.msk.f32.vlgmr.msra.gmra.mxu3 %vm187_vm1, %v184_v3 }
 0x301   :  { %v1334_v4 = vpop.eup %1333 }
 0x302   :  { %v320_v5 = vpop.xlane.xlu1 %319  ;;  %v256_v6 = vpop.permute.xlu2 %255  ;;  %v254_v7 = vmul.f32 %v1334_v4, %v1326_v52  ;;  %v115_v52 = vld [vmem:[%s1874_s5 + $0x30] sm:$0xff]  ;;  %v492_v4 = vperm.slane %v1575_v31, 2 }
 0x303   :  { %1335 = vrcp.f32 %v320_v5  ;;  %1238 = vmatpush.msk.msrb.mxu3 %vm191_vm0, %v256_v6  ;;  %533 = vmatpush.msra.mxu0 %v115_v52 }
 0x304   :  { %1239 = vmatmul.msk.f32.vlgmr.msrb.gmra.mxu3 %vm187_vm1, %v254_v7  ;;  %v111_v7 = vld [vmem:[%s1874_s5 + $0x10] sm:$0xff] }
 0x305   :  { %534 = vmatpush.msra.mxu0 %v114_v53 }
 0x307   :  { %535 = vmatpush.msra.mxu0 %v113_v56 }
 0x309   :  { %v1336_v8 = vpop.eup %1335  ;;  %536 = vmatpush.msra.mxu0 %v112_v58 }
 0x30a   :  { %v322_v11 = vmul.f32 %v1336_v8, %v1328_v57  ;;  %v388_v12 = vpop.xlane.xlu1 %387  ;;  %v110_v8 = vld [vmem:[%s1874_s5 + $0x8] sm:$0xff] }
 0x30b   :  { %1337 = vrcp.f32 %v388_v12  ;;  %537 = vmatpush.msra.mxu0 %v111_v7  ;;  %v1318_v12 = vld [vmem:[%s1873_s4 + $0x20] ss:$0 sm:$0xff] }
 0x30c   :  { %1243 = vmatmul.msk.f32.vlgmr.msra.gmra.mxu1 %vm187_vm1, %v322_v11  ;;  %1339 = vrcp.f32 %v1414_v37  ;;  %v109_v11 = vld [vmem:[%s1874_s5] sm:$0xff] }
 0x30d   :  { %538 = vmatpush.msra.mxu0 %v110_v8 }
 0x30f   :  { %539 = vmatpush.msra.mxu0 %v109_v11 }
 0x311   :  { %v1338_v13 = vpop.eup %1337 }
 0x312   :  { %v390_v14 = vmul.f32 %v1338_v13, %v1330_v60  ;;  %v1340_v38 = vpop.eup %1339 }
 0x313   :  { %v465_v39 = vmul.f32 32.0, %v1340_v38  ;;  %vm469_vm11 = vweird.f32 %v1340_v38 }
 0x315   :  { %v466_v40 = vsub.f32 1.0, %v465_v39 }
 0x317   :  { %v467_v41 = vmul.f32 %v1340_v38, %v466_v40 }
 0x319   :  { %v468_v42 = vadd.f32 %v1340_v38, %v467_v41  ;;  %v567_v41 = vperm.slane %v1575_v31, 4 }
 0x31b   :  { %v1581_v43 = vsel %vm469_vm11, %v1340_v38, %v468_v42  ;;  %vm1888_vm11 = vcmask 64512  }
 0x322   :  { %v392_v15 = vpop.permute.xlu1 %391 }
 0x323   :  { %1246 = vmatpush.msk.msra.mxu3 %vm191_vm0, %v392_v15 }
 0x324   :  { %1247 = vmatmul.msk.f32.vlgmr.msra.gmra.mxu3 %vm187_vm1, %v390_v14 }
 0x37f   :  { %v211_v16 = vpop.f32.mrf.mxu3 }
 0x387   :  { %v279_v17 = vpop.f32.mrf.mxu3 }
 0x388   :  { %419 = vrot.lane.b32.xlu0 %v279_v17, %s1411_s14 }
 0x389   :  { %v347_v18 = vpop.f32.mrf.mxu1 }
 0x38a   :  { %423 = vrot.lane.b32.xlu2 %v347_v18, %s1883_s15 }
 0x3a7   :  { %v415_v19 = vpop.f32.mrf.mxu3 }
 0x3a8   :  { %427 = vrot.lane.b32.xlu0 %v415_v19, %s1884_s16 }
 0x3e4   :  { %v424_v27 = vpop.permute.xlu2 %423 }
 0x3fa   :  { %v420_v24 = vpop.permute.xlu0 %419 }
 0x3fb   :  { %v430_v25 = vsel %vm1885_vm2, %v211_v16, %v420_v24  ;;  %v519_v16 = vperm.slane %v1575_v31, 3 }
 0x3fc   :  { %v432_v29 = vsel %vm431_vm3, %v430_v25, %v424_v27  ;;  %v1254_v27 = vld [vmem:[%s1871_s2 + $0x40] sm:$0xff] }
 0x3fd   :  { %615 = vmatpush.msrb.mxu3 %v1254_v27 }
 0x41a   :  { %v428_v28 = vpop.permute.xlu0 %427 }
 0x41b   :  { %v434_v30 = vsel %vm433_vm8, %v432_v29, %v428_v28  ;;  %v1253_v28 = vld [vmem:[%s1871_s2 + $0x38] sm:$0xff]  ;;  %v1252_v29 = vld [vmem:[%s1871_s2 + $0x30] sm:$0xff] }
 0x41c   :  { %1248 = vmatmul.msk.f32.vlgmr.msra.gmra.mxu2 %vm1886_vm9, %v434_v30  ;;  %616 = vmatpush.msrb.mxu3 %v1253_v28  ;;  %v1251_v30 = vld [vmem:[%s1871_s2 + $0x28] sm:$0xff] }
 0x41e   :  { %617 = vmatpush.msrb.mxu3 %v1252_v29 }
 0x420   :  { %618 = vmatpush.msrb.mxu3 %v1251_v30 }
 0x49f   :  { %v456_v33 = vpop.f32.mrf.mxu2 }
 0x4a0   :  { %v457_v34 = vadd.f32 %v456_v33, %v435_v32 }
 0x4a2   :  { %v459_v35 = vadd.f32 %v457_v34, %v94_v10  ;;  %v107_v10 = vld [vmem:[%s1873_s4 + $0x18] sm:$0xff] }
 0x4a3   :  { %510 = vmatpush.msrb.mxu1 %v107_v10 }
 0x4a4   :  { %v461_v36 = vsel %vm460_vm10, %v459_v35, 0.0 }
 0x4a5   :  { %462 = vadd.xlane.f32.xlu2 %v461_v36  ;;  %511 = vmatpush.msrb.mxu1 %v106_v48 }
 0x4a7   :  { %512 = vmatpush.msrb.mxu1 %v105_v49 }
 0x4a9   :  { %513 = vmatpush.msrb.mxu1 %v104_v50 }
 0x518   :  { %v463_v44 = vpop.xlane.xlu2 %462 }
 0x519   :  { %v471_v45 = vmul.f32 %v1581_v43, %v463_v44 }
 0x51b   :  { %v472_v46 = vsub.f32 %v459_v35, %v471_v45  ;;  %v569_v45 = vperm.slane %v1575_v31, 5 }
 0x51d   :  { %v473_v47 = vmul.f32 %v472_v46, %v472_v46 }
 0x51f   :  { %v474_v9 = vsel %vm460_vm10, %v473_v47, 0.0 }
 0x520   :  { %475 = vadd.xlane.f32.xlu1 %v474_v9  ;;  %v1319_v9 = vld [vmem:[%s1871_s2 + $0x48] ss:$0 sm:$0xff]  ;;  %s1896_s2 = smov 24  }
 0x593   :  { %v476_v54 = vpop.xlane.xlu1 %475 }
 0x594   :  { %v477_v55 = vmul.f32 %v476_v54, %v1581_v43 }
 0x596   :  { %v478_v57 = vadd.f32 1e-05, %v477_v55 }
 0x598   :  { %1341 = vrsqrt.f32 %v478_v57  ;;  %vm485_vm13 = vweird.f32 %v478_v57 }
 0x59e   :  { %v1342_v59 = vpop.eup %1341 }
 0x59f   :  { %v480_v60 = vmul.f32 %v1342_v59, %v478_v57  ;;  %vm486_vm12 = vweird.f32 %v1342_v59 }
 0x5a0   :  { %vm487_vm14 = vmor %vm485_vm13, %vm486_vm12 }
 0x5a1   :  { %v481_v61 = vmul.f32 %v1342_v59, %v480_v60  ;;  %vm1889_vm12 = vmmov %vm1888_vm11 }
 0x5a2   :  { %vm1890_vm13 = vmmov %vm1888_vm11 }
 0x5a3   :  { %v482_v62 = vmul.f32 0.5, %v481_v61 }
 0x5a5   :  { %v483_v63 = vsub.f32 1.5, %v482_v62 }
 0x5a7   :  { %v484_v0 = vmul.f32 %v1342_v59, %v483_v63 }
 0x5a9   :  { %v488_v2 = vsel %vm487_vm14, %v1342_v59, %v484_v0  ;;  %vm1891_vm14 = vmmov %vm1888_vm11 }
 0x5aa   :  { %v489_v3 = vmul.f32 %v488_v2, %v472_v46 }
 0x5ac   :  { %v491_v5 = vmul.f32 %v490_v1, %v489_v3 }
 0x5ae   :  { %v493_v6 = vadd.f32 %v492_v4, %v491_v5 }
 0x5b0   :  { %1249 = vmatmul.msk.f32.vlgmr.msrb.gmra.mxu1 %vm1887_vm15, %v493_v6  ;;  %vm1892_vm15 = vmmov %vm1888_vm11 }
 0x62d   :  { %v515_v13 = vpop.f32.mrf.mxu1 }
 0x62e   :  { %v516_v14 = vadd.f32 %v1318_v12, %v515_v13 }
 0x630   :  { %v518_v15 = vmax.f32 %v516_v14, 0.0 }
 0x632   :  { %1250 = vmatmul.msk.f32.vlgmr.msra.gmra.mxu0 %vm520_vm4, %v518_v15 }
 0x6af   :  { %v541_v17 = vpop.f32.mrf.mxu0 }
 0x6b0   :  { %v542_v18 = vadd.f32 %v541_v17, %v519_v16 }
 0x6b2   :  { %v544_v19 = vadd.f32 %v542_v18, %v493_v6 }
 0x6b4   :  { %v545_v20 = vsel %vm460_vm10, %v544_v19, 0.0 }
 0x6b5   :  { %546 = vadd.xlane.f32.xlu0 %v545_v20 }
 0x728   :  { %v547_v21 = vpop.xlane.xlu0 %546 }
 0x729   :  { %v548_v22 = vmul.f32 %v547_v21, %v1581_v43 }
 0x72b   :  { %v549_v23 = vsub.f32 %v544_v19, %v548_v22 }
 0x72d   :  { %v550_v24 = vmul.f32 %v549_v23, %v549_v23 }
 0x72f   :  { %v551_v25 = vsel %vm460_vm10, %v550_v24, 0.0 }
 0x730   :  { %552 = vadd.xlane.f32.xlu2 %v551_v25 }
 0x7a3   :  { %v553_v32 = vpop.xlane.xlu2 %552 }
 0x7a4   :  { %v554_v33 = vmul.f32 %v553_v32, %v1581_v43 }
 0x7a6   :  { %v555_v34 = vadd.f32 1e-05, %v554_v33 }
 0x7a8   :  { %1343 = vrsqrt.f32 %v555_v34  ;;  %vm562_vm6 = vweird.f32 %v555_v34 }
 0x7ae   :  { %v1344_v35 = vpop.eup %1343 }
 0x7af   :  { %v557_v36 = vmul.f32 %v1344_v35, %v555_v34  ;;  %vm563_vm5 = vweird.f32 %v1344_v35 }
 0x7b0   :  { %vm564_vm2 = vmor %vm562_vm6, %vm563_vm5 }
 0x7b1   :  { %v558_v37 = vmul.f32 %v1344_v35, %v557_v36  ;;  %vm1893_vm5 = vmmov %vm1888_vm11 }
 0x7b2   :  { %vm1894_vm6 = vmmov %vm1893_vm5 }
 0x7b3   :  { %v559_v38 = vmul.f32 0.5, %v558_v37 }
 0x7b5   :  { %v560_v39 = vsub.f32 1.5, %v559_v38 }
 0x7b7   :  { %v561_v40 = vmul.f32 %v1344_v35, %v560_v39 }
 0x7b9   :  { %v565_v42 = vsel %vm564_vm2, %v1344_v35, %v561_v40  ;;  %vm1895_vm2 = vmmov %vm1893_vm5 }
 0x7ba   :  { %v566_v44 = vmul.f32 %v565_v42, %v549_v23 }
 0x7bc   :  { %v568_v46 = vmul.f32 %v567_v41, %v566_v44 }
 0x7be   :  { %v1648_v47 = vadd.f32 %v569_v45, %v568_v46 }
 0x7c0   :  { %1274 = vmatmul.msk.f32.vlgmr.msrb.gmra.mxu3 %vm1886_vm9, %v1648_v47 }
 0x843   :  { %v620_v10 = vpop.f32.mrf.mxu3 }
 0x844   :  { %v1655_v48 = vadd.f32 %v1319_v9, %v620_v10 }
 0x846   :  { %692 = vrot.lane.b32.xlu2 %v1655_v48, %s1404_s29  ;;  %624 = vrot.lane.b32.xlu1 %v1655_v48, %s1401_s26  ;;  %s1219_s26 = sshll.u32 %s1878_s9, 4  ;;  %s1220_s26 = int_to_ptr.hbm [resolvable:$true] %s1219_s26 }
 0x84e   :  { %828 = vrot.lane.b32.xlu2 %v1655_v48, %s1402_s27 }
 0x856   :  { %663 = vrot.lane.b32.xlu2 %v1655_v48, %s1407_s10 }
 0x85e   :  { %758 = vrot.lane.b32.xlu2 %v1655_v48, %s1399_s24 }
 0x8a0   :  { %v693_v31 = vpop.permute.xlu2 %692 }
 0x8a1   :  { %1279 = vmatpush.xpose.msk.msra.mxu3 %vm1888_vm11, %v693_v31 }
 0x8a8   :  { %v829_v49 = vpop.permute.xlu2 %828 }
 0x8a9   :  { %1287 = vmatpush.xpose.msk.msrb.mxu3 %vm1889_vm12, %v829_v49  ;;  %v1259_v49 = vld [vmem:[%s1872_s3 + $0x38] sm:$0xff] }
 0x8b0   :  { %v664_v50 = vpop.permute.xlu2 %663 }
 0x8b1   :  { %1277 = vmatpush.msk.msra.mxu1 %vm191_vm0, %v664_v50  ;;  %v1257_v50 = vld [vmem:[%s1872_s3 + $0x28] sm:$0xff] }
 0x8b8   :  { %v625_v51 = vpop.permute.xlu1 %624  ;;  %v759_v3 = vpop.permute.xlu2 %758 }
 0x8b9   :  { %1275 = vmatpush.xpose.msk.msrb.mxu2 %vm1890_vm13, %v625_v51  ;;  %vm1902_vm13 = vcmask 31744  }
 0x8bc   :  { %1276 = vmatmul.msk.f32.vlgmr.msrb.gmra.mxu2 %vm1891_vm14, %v1655_v48 }
 0x93f   :  { %v647_v52 = vpop.f32.mrf.mxu2 }
 0x940   :  { %v650_v53 = vmul.f32 0.35355338, %v647_v52  ;;  %v1256_v52 = vld [vmem:[%s1872_s3 + $0x20] sm:$0xff] }
 0x942   :  { %v651_v54 = vadd.f32 %v650_v53, %v1523_v26 }
 0x944   :  { %v652_v55 = vsel %vm173_vm7, %v651_v54, -inf }
 0x945   :  { %653 = vmax.xlane.f32.xlu0 %v652_v55 }
 0x959   :  { %690 = vrot.lane.b32.xlu0 %v1655_v48, %s1400_s25 }
 0x961   :  { %826 = vrot.lane.b32.xlu0 %v1655_v48, %s1405_s30  ;;  %s1897_s30 = smov 16  }
 0x969   :  { %760 = vrot.lane.b32.xlu0 %v1655_v48, %s1403_s28 }
 0x9b8   :  { %v654_v56 = vpop.xlane.xlu0 %653 }
 0x9b9   :  { %v655_v57 = vsub.f32 %v651_v54, %v654_v56 }
 0x9bb   :  { %v656_v58 = vmul.f32 1.442695, %v655_v57 }
 0x9bd   :  { %1345 = vpow2.f32 %v656_v58 }
 0x9c3   :  { %v1346_v59 = vpop.eup %1345 }
 0x9c4   :  { %v658_v60 = vsel %vm173_vm7, %v1346_v59, 0.0 }
 0x9c5   :  { %659 = vadd.xlane.f32.xlu1 %v658_v60 }
 0x9cb   :  { %v691_v61 = vpop.permute.xlu0 %690 }
 0x9cc   :  { %1280 = vmatmul.msk.f32.vlgmr.msra.gmra.mxu3 %vm1892_vm15, %v691_v61  ;;  %vm1904_vm15 = vmmov %vm1902_vm13 }
 0x9d3   :  { %v827_v62 = vpop.permute.xlu0 %826 }
 0x9d4   :  { %1288 = vmatmul.msk.f32.vlgmr.msrb.gmra.mxu3 %vm1893_vm5, %v827_v62 }
 0x9db   :  { %v761_v63 = vpop.permute.xlu0 %760 }
 0x9dc   :  { %1283 = vmatpush.xpose.msk.msrb.mxu1 %vm1894_vm6, %v761_v63 }
 0xa38   :  { %v660_v0 = vpop.xlane.xlu1 %659 }
 0xa39   :  { %1347 = vrcp.f32 %v660_v0 }
 0xa3f   :  { %v1348_v1 = vpop.eup %1347 }
 0xa40   :  { %v662_v2 = vmul.f32 %v1348_v1, %v1346_v59  ;;  %v1733_v59 = vld [vmem:[%s1875_s6 + $0x8] sm:$0x3f] }
 0xa41   :  { %v909_v60 = vperm.slane %v1733_v59, 0 }
 0xa42   :  { %1278 = vmatmul.msk.f32.vlgmr.msra.gmra.mxu1 %vm187_vm1, %v662_v2 }
 0xa43   :  { %925 = vmatpush.msra.mxu1 %v1259_v49 }
 0xa4a   :  { %1284 = vmatmul.msk.f32.vlgmr.msrb.gmra.mxu1 %vm1895_vm2, %v759_v3 }
 0xa4f   :  { %v715_v4 = vpop.f32.mrf.mxu3 }
 0xa50   :  { %v718_v5 = vmul.f32 0.35355338, %v715_v4 }
 0xa52   :  { %v719_v6 = vadd.f32 %v718_v5, %v1523_v26 }
 0xa54   :  { %v720_v7 = vsel %vm173_vm7, %v719_v6, -inf }
 0xa55   :  { %721 = vmax.xlane.f32.xlu0 %v720_v7  ;;  %v1261_v7 = vld [vmem:[%s1873_s4 + $0x30] sm:$0xff] }
 0xa57   :  { %v851_v8 = vpop.f32.mrf.mxu3 }
 0xa58   :  { %v854_v11 = vmul.f32 0.35355338, %v851_v8  ;;  %v1260_v8 = vld [vmem:[%s1873_s4 + $0x28] sm:$0xff] }
 0xa5a   :  { %v855_v12 = vadd.f32 %v854_v11, %v1523_v26  ;;  %v1272_v11 = vld [vmem:[%s1874_s5 + $0x78] sm:$0xff] }
 0xa5b   :  { %997 = vmatpush.msra.mxu3 %v1272_v11  ;;  %v1079_v11 = vld [vmem:[%s1876_s7 + $0x20] sm:$0xff] }
 0xa5c   :  { %v856_v13 = vsel %vm173_vm7, %v855_v12, -inf }
 0xa5d   :  { %857 = vmax.xlane.f32.xlu2 %v856_v13  ;;  %v1270_v13 = vld [vmem:[%s1874_s5 + $0x68] sm:$0xff] }
 0xa69   :  { %731 = vrot.lane.b32.xlu0 %v1655_v48, %s1409_s12 }
 0xa75   :  { %867 = vrot.lane.b32.xlu2 %v1655_v48, %s1410_s13 }
 0xabf   :  { %v1695_v14 = vpop.f32.mrf.mxu1 }
 0xac7   :  { %v783_v15 = vpop.f32.mrf.mxu1 }
 0xac8   :  { %v786_v16 = vmul.f32 0.35355338, %v783_v15  ;;  %v722_v17 = vpop.xlane.xlu0 %721 }
 0xac9   :  { %v723_v18 = vsub.f32 %v719_v6, %v722_v17  ;;  %v1263_v6 = vld [vmem:[%s1873_s4 + $0x40] sm:$0xff] }
 0xaca   :  { %v787_v19 = vadd.f32 %v786_v16, %v1523_v26  ;;  %v1269_v16 = vld [vmem:[%s1874_s5 + $0x60] sm:$0xff] }
 0xacb   :  { %v724_v20 = vmul.f32 1.442695, %v723_v18  ;;  %v1268_v18 = vld [vmem:[%s1874_s5 + $0x58] sm:$0xff] }
 0xacc   :  { %v788_v21 = vsel %vm173_vm7, %v787_v19, -inf }
 0xacd   :  { %1349 = vpow2.f32 %v724_v20  ;;  %789 = vmax.xlane.f32.xlu1 %v788_v21 }
 0xad0   :  { %v858_v22 = vpop.xlane.xlu2 %857 }
 0xad1   :  { %v859_v23 = vsub.f32 %v855_v12, %v858_v22  ;;  %v1271_v12 = vld [vmem:[%s1874_s5 + $0x70] sm:$0xff] }
 0xad2   :  { %998 = vmatpush.msra.mxu3 %v1271_v12  ;;  %v1078_v12 = vld [vmem:[%s1876_s7 + $0x18] sm:$0xff] }
 0xad3   :  { %v1350_v24 = vpop.eup %1349  ;;  %v860_v25 = vmul.f32 1.442695, %v859_v23 }
 0xad4   :  { %v726_v27 = vsel %vm173_vm7, %v1350_v24, 0.0  ;;  %999 = vmatpush.msra.mxu3 %v1270_v13  ;;  %v1077_v13 = vld [vmem:[%s1876_s7 + $0x10] sm:$0xff] }
 0xad5   :  { %1351 = vpow2.f32 %v860_v25  ;;  %727 = vadd.xlane.f32.xlu1 %v726_v27  ;;  %v956_v25 = vperm.slane %v1733_v59, 1 }
 0xad6   :  { %1000 = vmatpush.msra.mxu3 %v1269_v16  ;;  %v1075_v16 = vld [vmem:[%s1876_s7] sm:$0xff] }
 0xad8   :  { %v868_v30 = vpop.permute.xlu2 %867  ;;  %1001 = vmatpush.msra.mxu3 %v1268_v18 }
 0xadb   :  { %v1352_v28 = vpop.eup %1351  ;;  %v732_v29 = vpop.permute.xlu0 %731 }
 0xadc   :  { %1281 = vmatpush.msk.msra.mxu2 %vm191_vm0, %v732_v29  ;;  %v862_v26 = vsel %vm173_vm7, %v1352_v28, 0.0  ;;  %v958_v29 = vperm.slane %v1733_v59, 2 }
 0xadd   :  { %863 = vadd.xlane.f32.xlu1 %v862_v26 }
 0xade   :  { %1289 = vmatpush.msk.msrb.mxu2 %vm191_vm0, %v868_v30 }
 0xb40   :  { %v790_v32 = vpop.xlane.xlu1 %789 }
 0xb41   :  { %v791_v33 = vsub.f32 %v787_v19, %v790_v32  ;;  %v1267_v32 = vld [vmem:[%s1874_s5 + $0x50] sm:$0xff] }
 0xb42   :  { %1002 = vmatpush.msra.mxu3 %v1267_v32 }
 0xb43   :  { %v792_v34 = vmul.f32 1.442695, %v791_v33  ;;  %v1266_v33 = vld [vmem:[%s1874_s5 + $0x48] sm:$0xff] }
 0xb44   :  { %1003 = vmatpush.msra.mxu3 %v1266_v33  ;;  %v1372_v33 = vld [vmem:[%s1875_s6 + $0x10] sm:$0x3f] }
 0xb45   :  { %1353 = vpow2.f32 %v792_v34  ;;  %v1265_v34 = vld [vmem:[%s1874_s5 + $0x40] sm:$0xff] }
 0xb46   :  { %1004 = vmatpush.msra.mxu3 %v1265_v34  ;;  %v1058_v34 = vperm.slane %v1372_v33, 1 }
 0xb48   :  { %v728_v35 = vpop.xlane.xlu1 %727 }
 0xb49   :  { %1355 = vrcp.f32 %v728_v35  ;;  %v1320_v35 = vld [vmem:[%s1873_s4 + $0x48] ss:$0 sm:$0xff] }
 0xb4b   :  { %v1354_v36 = vpop.eup %1353 }
 0xb4c   :  { %v794_v37 = vsel %vm173_vm7, %v1354_v36, 0.0  ;;  %vm1898_vm7 = vmmov %vm1895_vm2 }
 0xb4d   :  { %795 = vadd.xlane.f32.xlu1 %v794_v37 }
 0xb4f   :  { %v1356_v38 = vpop.eup %1355 }
 0xb50   :  { %v730_v39 = vmul.f32 %v1356_v38, %v1350_v24  ;;  %v864_v40 = vpop.xlane.xlu1 %863 }
 0xb51   :  { %1357 = vrcp.f32 %v864_v40 }
 0xb52   :  { %1282 = vmatmul.msk.f32.vlgmr.msra.gmra.mxu2 %vm187_vm1, %v730_v39  ;;  %v985_v39 = vperm.slane %v1733_v59, 3 }
 0xb57   :  { %v1358_v41 = vpop.eup %1357 }
 0xb58   :  { %v866_v42 = vmul.f32 %v1358_v41, %v1352_v28 }
 0xb5a   :  { %1290 = vmatmul.msk.f32.vlgmr.msrb.gmra.mxu2 %vm187_vm1, %v866_v42 }
 0xb66   :  { %799 = vrot.lane.b32.xlu1 %v1655_v48, %s1408_s11  ;;  %v1258_v48 = vld [vmem:[%s1872_s3 + $0x30] sm:$0xff] }
 0xb67   :  { %926 = vmatpush.msra.mxu1 %v1258_v48 }
 0xb69   :  { %927 = vmatpush.msra.mxu1 %v1257_v50 }
 0xb6b   :  { %928 = vmatpush.msra.mxu1 %v1256_v52 }
 0xb6d   :  { %1122 = vmatpush.msrb.mxu1 %v1078_v12 }
 0xb6f   :  { %1123 = vmatpush.msrb.mxu1 %v1077_v13 }
 0xbc0   :  { %v796_v44 = vpop.xlane.xlu1 %795 }
 0xbc1   :  { %1359 = vrcp.f32 %v796_v44 }
 0xbc7   :  { %v1360_v45 = vpop.eup %1359 }
 0xbc8   :  { %v798_v9 = vmul.f32 %v1360_v45, %v1354_v36 }
 0xbd5   :  { %v755_v46 = vpop.f32.mrf.mxu2 }
 0xbd6   :  { %895 = vrot.lane.b32.xlu0 %v755_v46, %s1411_s14 }
 0xbd8   :  { %v800_v10 = vpop.permute.xlu1 %799 }
 0xbd9   :  { %1285 = vmatpush.msk.msrb.mxu0 %vm191_vm0, %v800_v10  ;;  %vm1899_vm0 = vmmov %vm1886_vm9 }
 0xbda   :  { %1286 = vmatmul.msk.f32.vlgmr.msrb.gmra.mxu0 %vm187_vm1, %v798_v9  ;;  %vm1900_vm9 = vmmov %vm1899_vm0 }
 0xbdb   :  { %976 = vmatpush.msra.mxu0 %v1263_v6  ;;  %v1371_v6 = vld [vmem:[%s1869_s0] sm:$0x3f] }
 0xbdd   :  { %v891_v31 = vpop.f32.mrf.mxu2 }
 0xbde   :  { %903 = vrot.lane.b32.xlu2 %v891_v31, %s1896_s2 }
 0xc38   :  { %v904_v56 = vpop.permute.xlu2 %903 }
 0xc48   :  { %v896_v53 = vpop.permute.xlu0 %895 }
 0xc49   :  { %v906_v54 = vsel %vm1898_vm7, %v1695_v14, %v896_v53  ;;  %vm1905_vm7 = vmmov %vm1899_vm0 }
 0xc57   :  { %v823_v51 = vpop.f32.mrf.mxu0 }
 0xc58   :  { %899 = vrot.lane.b32.xlu0 %v823_v51, %s1897_s30 }
 0xcca   :  { %v900_v55 = vpop.permute.xlu0 %899 }
 0xccb   :  { %v907_v57 = vsel %vm431_vm3, %v906_v54, %v900_v55 }
 0xccc   :  { %v908_v58 = vsel %vm433_vm8, %v907_v57, %v904_v56  ;;  %v1032_v57 = vperm.slane %v1733_v59, 4 }
 0xccd   :  { %1291 = vmatmul.msk.f32.vlgmr.msra.gmra.mxu1 %vm1899_vm0, %v908_v58  ;;  %vm1173_vm0 = vcmask 785408  }
 0xd4a   :  { %v930_v61 = vpop.f32.mrf.mxu1 }
 0xd4b   :  { %v931_v62 = vadd.f32 %v930_v61, %v909_v60  ;;  %v1034_v61 = vperm.slane %v1733_v59, 5  ;;  %v1072_v59 = vrot.slane %v1371_v6, 4 }
 0xd4d   :  { %v933_v63 = vadd.f32 %v931_v62, %v1648_v47  ;;  %v1262_v47 = vld [vmem:[%s1873_s4 + $0x38] sm:$0xff] }
 0xd4e   :  { %977 = vmatpush.msra.mxu0 %v1262_v47  ;;  %v1069_v47 = vrot.slane %v1371_v6, 2 }
 0xd4f   :  { %v934_v0 = vsel %vm460_vm10, %v933_v63, 0.0 }
 0xd50   :  { %935 = vadd.xlane.f32.xlu1 %v934_v0  ;;  %978 = vmatpush.msra.mxu0 %v1261_v7  ;;  %v1071_v7 = vadd.f32 %v1371_v6, %v1069_v47 }
 0xd52   :  { %979 = vmatpush.msra.mxu0 %v1260_v8  ;;  %v1074_v8 = vadd.f32 %v1072_v59, %v1071_v7 }
 0xdc3   :  { %v936_v1 = vpop.xlane.xlu1 %935 }
 0xdc4   :  { %v937_v2 = vmul.f32 %v936_v1, %v1581_v43 }
 0xdc6   :  { %v938_v3 = vsub.f32 %v933_v63, %v937_v2 }
 0xdc8   :  { %v939_v4 = vmul.f32 %v938_v3, %v938_v3 }
 0xdca   :  { %v940_v5 = vsel %vm460_vm10, %v939_v4, 0.0 }
 0xdcb   :  { %941 = vadd.xlane.f32.xlu0 %v940_v5 }
 0xe3e   :  { %v942_v14 = vpop.xlane.xlu0 %941 }
 0xe3f   :  { %v943_v15 = vmul.f32 %v942_v14, %v1581_v43  ;;  %v1130_v14 = vrot.slane %v1079_v11, 4 }
 0xe41   :  { %v944_v17 = vadd.f32 1e-05, %v943_v15  ;;  %v1076_v15 = vld [vmem:[%s1876_s7 + $0x8] sm:$0xff] }
 0xe42   :  { %1124 = vmatpush.msrb.mxu1 %v1076_v15 }
 0xe43   :  { %1361 = vrsqrt.f32 %v944_v17  ;;  %vm951_vm3 = vweird.f32 %v944_v17 }
 0xe44   :  { %1125 = vmatpush.msrb.mxu1 %v1075_v16 }
 0xe49   :  { %v1362_v19 = vpop.eup %1361 }
 0xe4a   :  { %v946_v20 = vmul.f32 %v1362_v19, %v944_v17  ;;  %vm952_vm1 = vweird.f32 %v1362_v19 }
 0xe4b   :  { %vm953_vm8 = vmor %vm951_vm3, %vm952_vm1  ;;  %vm1197_vm1 = vcmask 123904  }
 0xe4c   :  { %v947_v21 = vmul.f32 %v1362_v19, %v946_v20  ;;  %v1170_v20 = vld [vmem:[%s1877_s8 + $0x58] sm:$0xff] }
 0xe4e   :  { %v948_v22 = vmul.f32 0.5, %v947_v21  ;;  %v1169_v21 = vld [vmem:[%s1877_s8 + $0x50] sm:$0xff] }
 0xe50   :  { %v949_v23 = vsub.f32 1.5, %v948_v22  ;;  %v1168_v22 = vld [vmem:[%s1877_s8 + $0x48] sm:$0xff] }
 0xe52   :  { %v950_v24 = vmul.f32 %v1362_v19, %v949_v23  ;;  %v1166_v23 = vld [vmem:[%s1877_s8 + $0x38] sm:$0xff] }
 0xe54   :  { %v954_v27 = vsel %vm953_vm8, %v1362_v19, %v950_v24 }
 0xe55   :  { %v955_v28 = vmul.f32 %v954_v27, %v938_v3 }
 0xe57   :  { %v957_v30 = vmul.f32 %v956_v25, %v955_v28  ;;  %v1165_v25 = vld [vmem:[%s1877_s8 + $0x30] sm:$0xff]  ;;  %v1164_v28 = vld [vmem:[%s1877_s8 + $0x28] sm:$0xff] }
 0xe59   :  { %v959_v26 = vadd.f32 %v958_v29, %v957_v30 }
 0xe5b   :  { %1292 = vmatmul.msk.f32.vlgmr.msra.gmra.mxu0 %vm1900_vm9, %v959_v26 }
 0xed8   :  { %v981_v36 = vpop.f32.mrf.mxu0 }
 0xed9   :  { %v982_v37 = vadd.f32 %v1320_v35, %v981_v36  ;;  %v1060_v36 = vperm.slane %v1372_v33, 2 }
 0xedb   :  { %v984_v38 = vmax.f32 %v982_v37, 0.0 }
 0xedd   :  { %1293 = vmatmul.msk.f32.vlgmr.msra.gmra.mxu3 %vm520_vm4, %v984_v38 }
 0xf60   :  { %v1006_v40 = vpop.f32.mrf.mxu3 }
 0xf61   :  { %v1007_v41 = vadd.f32 %v1006_v40, %v985_v39 }
 0xf63   :  { %v1009_v42 = vadd.f32 %v1007_v41, %v959_v26 }
 0xf65   :  { %v1010_v44 = vsel %vm460_vm10, %v1009_v42, 0.0 }
 0xf66   :  { %1011 = vadd.xlane.f32.xlu2 %v1010_v44 }
 0xfd9   :  { %v1012_v45 = vpop.xlane.xlu2 %1011 }
 0xfda   :  { %v1013_v46 = vmul.f32 %v1012_v45, %v1581_v43  ;;  %v1163_v45 = vld [vmem:[%s1877_s8 + $0x20] sm:$0xff] }
 0xfdc   :  { %v1014_v9 = vsub.f32 %v1009_v42, %v1013_v46  ;;  %v1162_v46 = vld [vmem:[%s1877_s8 + $0x18] sm:$0xff] }
 0xfde   :  { %v1015_v10 = vmul.f32 %v1014_v9, %v1014_v9 }
 0xfe0   :  { %v1016_v31 = vsel %vm460_vm10, %v1015_v10, 0.0  ;;  %v1160_v10 = vld [vmem:[%s1877_s8 + $0x8] sm:$0xff] }
 0xfe1   :  { %1017 = vadd.xlane.f32.xlu1 %v1016_v31  ;;  %v1159_v31 = vld [vmem:[%s1877_s8] sm:$0xff] }
0x1054   :  { %v1018_v49 = vpop.xlane.xlu1 %1017 }
0x1055   :  { %v1019_v48 = vmul.f32 %v1018_v49, %v1581_v43 }
0x1057   :  { %v1020_v50 = vadd.f32 1e-05, %v1019_v48 }
0x1059   :  { %1363 = vrsqrt.f32 %v1020_v50  ;;  %vm1027_vm11 = vweird.f32 %v1020_v50 }
0x105f   :  { %v1364_v51 = vpop.eup %1363 }
0x1060   :  { %v1022_v52 = vmul.f32 %v1364_v51, %v1020_v50  ;;  %vm1028_vm4 = vweird.f32 %v1364_v51 }
0x1061   :  { %vm1029_vm12 = vmor %vm1027_vm11, %vm1028_vm4 }
0x1062   :  { %v1023_v53 = vmul.f32 %v1364_v51, %v1022_v52  ;;  %v1321_v52 = vld [vmem:[%s1876_s7 + $0x28] ss:$0 sm:$0xff]  ;;  %s1415_s7 = smov [#allocation2]  }
0x1064   :  { %v1024_v54 = vmul.f32 0.5, %v1023_v53 }
0x1066   :  { %v1025_v55 = vsub.f32 1.5, %v1024_v54 }
0x1068   :  { %v1026_v56 = vmul.f32 %v1364_v51, %v1025_v55 }
0x106a   :  { %v1030_v58 = vsel %vm1029_vm12, %v1364_v51, %v1026_v56  ;;  %v1322_v56 = vld [vmem:[%s1877_s8 + $0x60] ss:$0 sm:$0xff] }
0x106b   :  { %v1031_v60 = vmul.f32 %v1030_v58, %v1014_v9  ;;  %v1161_v9 = vld [vmem:[%s1877_s8 + $0x10] sm:$0xff] }
0x106d   :  { %v1033_v62 = vmul.f32 %v1032_v57, %v1031_v60 }
0x106f   :  { %v1035_v63 = vadd.f32 %v1034_v61, %v1033_v62 }
0x1071   :  { %v1036_v0 = vsel %vm460_vm10, %v1035_v63, 0.0 }
0x1072   :  { %1037 = vadd.xlane.f32.xlu0 %v1036_v0 }
0x10e5   :  { %v1038_v1 = vpop.xlane.xlu0 %1037 }
0x10e6   :  { %v1039_v2 = vmul.f32 %v1038_v1, %v1581_v43 }
0x10e8   :  { %v1040_v3 = vsub.f32 %v1035_v63, %v1039_v2 }
0x10ea   :  { %v1041_v4 = vmul.f32 %v1040_v3, %v1040_v3 }
0x10ec   :  { %v1042_v5 = vsel %vm460_vm10, %v1041_v4, 0.0  ;;  %vm1901_vm10 = vcmask 1043456  }
0x10ed   :  { %1043 = vadd.xlane.f32.xlu2 %v1042_v5  ;;  %1294 = vmatpush.msk.msra.mxu2 %vm1901_vm10, %v1079_v11  ;;  %vm1903_vm14 = vmmov %vm1901_vm10 }
0x10ee   :  { %1295 = vmatmul.msk.f32.vlgmr.msra.gmra.mxu2 %vm1902_vm13, %v1074_v8  ;;  %1297 = vmatpush.msk.msrb.mxu0 %vm1903_vm14, %v1130_v14 }
0x10ef   :  { %1298 = vmatmul.msk.f32.vlgmr.msrb.gmra.mxu0 %vm1904_vm15, %v1072_v59  ;;  %1181 = vmatpush.msrb.mxu2 %v1170_v20 }
0x10f1   :  { %1182 = vmatpush.msrb.mxu2 %v1169_v21 }
0x10f3   :  { %1183 = vmatpush.msrb.mxu2 %v1168_v22 }
0x1160   :  { %v1044_v17 = vpop.xlane.xlu2 %1043 }
0x1161   :  { %v1045_v18 = vmul.f32 %v1044_v17, %v1581_v43  ;;  %v1167_v43 = vld [vmem:[%s1877_s8 + $0x40] sm:$0xff]  ;;  %s1217_s8 = sshll.u32 %s1415_s7, 4  ;;  %s1218_s8 = int_to_ptr.vmem [resolvable:$true] %s1217_s8 }
0x1162   :  { %1184 = vmatpush.msrb.mxu2 %v1167_v43 }
0x1163   :  { %v1046_v19 = vadd.f32 1e-05, %v1045_v18 }
0x1164   :  { %1185 = vmatpush.msrb.mxu2 %v1166_v23 }
0x1165   :  { %1365 = vrsqrt.f32 %v1046_v19  ;;  %vm1053_vm6 = vweird.f32 %v1046_v19 }
0x1166   :  { %1186 = vmatpush.msrb.mxu2 %v1165_v25 }
0x1168   :  { %1187 = vmatpush.msrb.mxu2 %v1164_v28 }
0x116a   :  { %1188 = vmatpush.msrb.mxu2 %v1163_v45 }
0x116b   :  { %v1366_v24 = vpop.eup %1365 }
0x116c   :  { %v1048_v27 = vmul.f32 %v1366_v24, %v1046_v19  ;;  %vm1054_vm5 = vweird.f32 %v1366_v24  ;;  %1189 = vmatpush.msrb.mxu2 %v1162_v46  ;;  %v1152_v50 = vpop.f32.mrf.mxu0 }
0x116d   :  { %vm1055_vm2 = vmor %vm1053_vm6, %vm1054_vm5 }
0x116e   :  { %v1049_v29 = vmul.f32 %v1366_v24, %v1048_v27  ;;  %1190 = vmatpush.msrb.mxu2 %v1161_v9 }
0x1170   :  { %v1050_v30 = vmul.f32 0.5, %v1049_v29  ;;  %1191 = vmatpush.msrb.mxu2 %v1160_v10 }
0x1171   :  { %v1104_v49 = vpop.f32.mrf.mxu2 }
0x1172   :  { %v1051_v26 = vsub.f32 1.5, %v1050_v30  ;;  %1192 = vmatpush.msrb.mxu2 %v1159_v31 }
0x1174   :  { %v1052_v32 = vmul.f32 %v1366_v24, %v1051_v26 }
0x1176   :  { %v1056_v35 = vsel %vm1055_vm2, %v1366_v24, %v1052_v32 }
0x1177   :  { %v1057_v37 = vmul.f32 %v1056_v35, %v1040_v3 }
0x1179   :  { %v1059_v38 = vmul.f32 %v1058_v34, %v1057_v37 }
0x117b   :  { %v1061_v39 = vadd.f32 %v1060_v36, %v1059_v38 }
0x117d   :  { %v1063_v40 = vrot.slane %v1061_v39, 2  ;;  %v1066_v42 = vrot.slane %v1061_v39, 4 }
0x117f   :  { %v1065_v41 = vmax.f32 %v1061_v39, %v1063_v40 }
0x1181   :  { %v1068_v44 = vmax.f32 %v1065_v41, %v1066_v42 }
0x1183   :  { %1296 = vmatmul.msk.f32.vlgmr.msrb.gmra.mxu1 %vm1905_vm7, %v1068_v44 }
0x1200   :  { %v1127_v48 = vpop.f32.mrf.mxu1 }
0x1201   :  { %v1128_v51 = vadd.f32 %v1127_v48, %v1104_v49 }
0x1203   :  { %v1155_v53 = vadd.f32 %v1152_v50, %v1128_v51 }
0x1205   :  { %v1157_v54 = vadd.f32 %v1321_v52, %v1155_v53 }
0x1207   :  { %v1158_v55 = vmax.f32 %v1157_v54, 0.0 }
0x1209   :  { %1299 = vmatmul.msk.f32.vlgmr.msrb.gmra.mxu2 %vm1173_vm0, %v1158_v55 }
0x128c   :  { %v1194_v57 = vpop.f32.mrf.mxu2 }
0x128d   :  { %v1195_v58 = vadd.f32 %v1322_v56, %v1194_v57 }
0x128f   :  { %v1198_v60 = vsel %vm1197_vm1, %v1195_v58, -inf }
0x1290   :  { %1199 = vmax.xlane.f32.xlu1 %v1198_v60 }
0x1303   :  { %v1200_v61 = vpop.xlane.xlu1 %1199 }
0x1304   :  { %v1201_v62 = vsub.f32 %v1195_v58, %v1200_v61 }
0x1306   :  { %v1202_v63 = vmul.f32 1.442695, %v1201_v62 }
0x1308   :  { %1367 = vpow2.f32 %v1202_v63 }
0x130e   :  { %v1368_v0 = vpop.eup %1367 }
0x130f   :  { %v1204_v1 = vsel %vm1197_vm1, %v1368_v0, 0.0 }
0x1310   :  { %1205 = vadd.xlane.f32.xlu0 %v1204_v1 }
0x1383   :  { %v1206_v2 = vpop.xlane.xlu0 %1205 }
0x1384   :  { %1369 = vlog2.f32 %v1206_v2 }
0x138a   :  { %v1370_v3 = vpop.eup %1369 }
0x138b   :  { %v1208_v4 = vmul.f32 0.6931472, %v1370_v3 }
0x138d   :  { %v1209_v5 = vadd.f32 %v1208_v4, %v1200_v61 }
0x138f   :  { %v1210_v6 = vsub.f32 %v1195_v58, %v1209_v5 }
0x1391   :  { %1211 = vst.msk [vmem:[#allocation2] sm:$0x3] %vm1197_vm1, %v1210_v6 }
0x1392   :  { %1222 = dma.vmem_to_hbm [thread:$0]  %s1218_s8, 32, %s1220_s26, [#allocation3]  }
0x1393   :  { %1397 = dma.done.wait [#allocation3], 32  }
0x1394   :  { %1398 = vsyncadd [#allocation3], 4294967264 }
0x1395   :  { %1227 = vsyncpa [#allocation3], 1 }

</bundles_post_ra>
